<compile_context>
chip_gen: v7x
topology: tpu7x:2x2x1
jax: 0.10.0
libtpu: 0.0.40
codegen_flags: <defaults>
</compile_context>

<pallas_src>
import functools

import jax
import jax.numpy as jnp
import numpy as np
from jax import lax
from jax.experimental import pallas as pl
from jax.experimental.pallas import tpu as pltpu


# ---------------------------------------------------------------------------
# helpers
# ---------------------------------------------------------------------------
def _pick_tile(S, candidates=(512, 256, 128)):
    """Lane-aligned spatial tile: prefer >=2 tiles (pipeline depth / megacore
    work), else any aligned divisor, else the full extent (masked stores are a
    perf-only concern in that last case)."""
    for t in candidates:
        if S % t == 0 and S // t >= 2:
            return t
    for t in candidates:
        if S % t == 0:
            return t
    return S


def _vmem_limit_bytes(est_bytes):
    """2x the estimated working set, floored at 16 MiB, capped at ~75% of the
    physical per-core VMEM (~48 MiB on v7x's 64 MiB cores, ~96 MiB on
    v5e/v6e's 128 MiB) to leave headroom for compiler scratch / semaphores /
    double buffers."""
    try:
        cap = int(pltpu.get_tpu_info().vmem_capacity_bytes)
    except Exception:  # query unavailable -> assume the smallest (v7x per-TC)
        cap = 64 * 2**20
    budget = (3 * cap) // 4
    return int(max(8 * 2**20, min(budget, max(2 * est_bytes, 16 * 2**20))))


def _tile_sample_coords(flow_x, flow_y, flow_z, tile_start, D, H, W, T):
    """Per-output-position sampling coordinates for one spatial tile.

    The base (w,h,d) voxel coordinates are generated in-kernel from a lane
    iota + the tile offset (no (3,S) coords stream from HBM).  The div/mod
    index recovery is done in f32 with a +0.5 guard so it is exact and never
    needs a vector integer divide.  Folded algebra (align_corners=False,
    identity theta):  ix = w + 0.5*W*flow_x  (likewise y,z)."""
    f32 = jnp.float32
    lin = (lax.broadcasted_iota(jnp.int32, (1, T), 1) + tile_start).astype(f32)
    q0 = jnp.floor((lin + 0.5) / W)            # = h + H*d
    wq = lin - W * q0
    q1 = jnp.floor((q0 + 0.5) / H)             # = d
    hq = q0 - H * q1
    dq = q1
    ix = wq + (0.5 * W) * flow_x
    iy = hq + (0.5 * H) * flow_y
    iz = dq + (0.5 * D) * flow_z
    ix0f, iy0f, iz0f = jnp.floor(ix), jnp.floor(iy), jnp.floor(iz)
    return (ix0f.astype(jnp.int32), iy0f.astype(jnp.int32),
            iz0f.astype(jnp.int32), ix - ix0f, iy - iy0f, iz - iz0f)


_CORNERS = tuple((dz, dy, dx) for dz in (0, 1) for dy in (0, 1) for dx in (0, 1))


def _corner(ix0, iy0, iz0, fx, fy, fz, dz, dy, dx, D, H, W):
    """One trilinear corner: flat source index, weight, validity mask (1,T)."""
    xi = ix0 + dx
    yi = iy0 + dy
    zi = iz0 + dz
    wgt = ((fx if dx else 1.0 - fx) *
           (fy if dy else 1.0 - fy) *
           (fz if dz else 1.0 - fz))
    valid = ((xi >= 0) & (xi < W) & (yi >= 0) & (yi < H) &
             (zi >= 0) & (zi < D))
    flat = zi * (H * W) + yi * W + xi
    return flat, wgt, valid


# ---------------------------------------------------------------------------
# primary kernel: spatially tiled lane-axis gathers + VPU FMAs (O(C*S) work)
# ---------------------------------------------------------------------------
def _warp_gather_kernel(flow_ref, x_ref, o_ref, *, D, H, W, flow_sct):
    """flow_ref: (3,T) if flow_sct else (T,3); x_ref: (C,S) resident across
    the spatial-tile grid axis; o_ref: (C,T)."""
    S = D * H * W
    C, T = o_ref.shape
    f32 = jnp.float32

    if flow_sct:
        fl = flow_ref[...].astype(f32)                  # (3, T)
    else:
        fl = jnp.transpose(flow_ref[...].astype(f32))   # (T,3)->(3,T): tiny XLU op
    ix0, iy0, iz0, fx, fy, fz = _tile_sample_coords(
        fl[0:1, :], fl[1:2, :], fl[2:3, :], pl.program_id(1) * T, D, H, W, T)

    xv = x_ref[...].astype(f32)                         # (C, S)
    acc = jnp.zeros((C, T), f32)
    # Python-unrolled 8-corner loop: with the (C,T) tile the per-corner temps
    # are bounded, and indices stay (1,T) (no (C,·) int32 broadcast temps).
    for dz, dy, dx in _CORNERS:
        flat, wgt, valid = _corner(ix0, iy0, iz0, fx, fy, fz, dz, dy, dx, D, H, W)
        idx = jnp.clip(flat, 0, S - 1)                  # (1, T) int32
        g = jnp.take_along_axis(xv, idx, axis=1,
                                mode="promise_in_bounds")   # (C, T)
        acc = acc + jnp.where(valid, g * wgt, 0.0)      # zeros padding, NaN-safe
    o_ref[...] = acc.astype(o_ref.dtype)


def _warp_gather(flow, x_flat, *, D, H, W, flow_sct):
    N, C, S = x_flat.shape
    T = _pick_tile(S)
    kernel = functools.partial(_warp_gather_kernel, D=D, H=H, W=W,
                               flow_sct=flow_sct)
    if flow_sct:
        flow_spec = pl.BlockSpec((None, 3, T), lambda n, j: (n, 0, j))
    else:
        flow_spec = pl.BlockSpec((None, T, 3), lambda n, j: (n, j, 0))
    # resident x (double-buffered) + flow/out tiles (lane-padded) + temps
    est = 4 * (2 * C * S + 2 * C * T + 2 * 128 * max(T, 8) + (6 * C + 48) * T)
    return pl.pallas_call(
        kernel,
        out_shape=jax.ShapeDtypeStruct((N, C, S), x_flat.dtype),
        grid_spec=pltpu.PrefetchScalarGridSpec(
            num_scalar_prefetch=0,
            grid=(N, S // T),
            in_specs=[
                flow_spec,
                # full (C,S) x block, same index across j => VMEM-resident
                pl.BlockSpec((None, C, S), lambda n, j: (n, 0, 0)),
            ],
            out_specs=pl.BlockSpec((None, C, T), lambda n, j: (n, 0, j)),
        ),
        compiler_params=pltpu.CompilerParams(
            dimension_semantics=("parallel", "parallel"),
            vmem_limit_bytes=_vmem_limit_bytes(est),
        ),
    )(flow, x_flat)


# ---------------------------------------------------------------------------
# fallback kernel: K-tiled one-hot interpolation matrix + MXU matmul
# ---------------------------------------------------------------------------
def _warp_matmul_kernel(flow_ref, x_ref, o_ref, acc_ref, *, D, H, W):
    """flow_ref: (3,T); x_ref: (C,TK) source slab; o_ref: (C,T);
    acc_ref: (C,T) f32 accumulator over the contraction (k) grid axis."""
    S = D * H * W
    C, T = o_ref.shape
    TK = x_ref.shape[-1]
    k = pl.program_id(2)
    f32 = jnp.float32

    @pl.when(k == 0)
    def _():
        acc_ref[...] = jnp.zeros_like(acc_ref)

    fl = flow_ref[...].astype(f32)
    ix0, iy0, iz0, fx, fy, fz = _tile_sample_coords(
        fl[0:1, :], fl[1:2, :], fl[2:3, :], pl.program_id(1) * T, D, H, W, T)

    # (TK,T) slab of the one-hot interpolation matrix, built by overwrite-
    # select.  Invariant: the valid corner flat indices of one output column
    # are always distinct and each falls in exactly one k slab, so plain
    # overwrite (no add) is correct; invalid corners use idx=-1 and never
    # match the global row iota.
    row = lax.broadcasted_iota(jnp.int32, (TK, T), 0) + k * TK
    m = jnp.zeros((TK, T), f32)
    for dz, dy, dx in _CORNERS:
        flat, wgt, valid = _corner(ix0, iy0, iz0, fx, fy, fz, dz, dy, dx, D, H, W)
        idx = jnp.where(valid, flat, -1)        # (1, T)
        m = jnp.where(row == idx, wgt, m)

    # HIGHEST kept: DEFAULT (bf16) weight rounding violates the 1e-4 check and
    # the slab build, not the MXU, is the binding slot of this path.
    acc_ref[...] += jnp.dot(x_ref[...].astype(f32), m,
                            preferred_element_type=jnp.float32,
                            precision=lax.Precision.HIGHEST)

    @pl.when(k == pl.num_programs(2) - 1)
    def _():
        o_ref[...] = acc_ref[...].astype(o_ref.dtype)


def _warp_matmul(flow_3s, x_flat, *, D, H, W):
    N, C, S = x_flat.shape
    T = _pick_tile(S)
    TK = _pick_tile(S)
    kernel = functools.partial(_warp_matmul_kernel, D=D, H=H, W=W)
    # one-hot slab + row iota + select temps (~3*TK*T f32) dominate
    est = 4 * (3 * TK * T + 2 * C * TK + 3 * C * T + 2 * 8 * T + 24 * T)
    return pl.pallas_call(
        kernel,
        out_shape=jax.ShapeDtypeStruct((N, C, S), x_flat.dtype),
        grid_spec=pltpu.PrefetchScalarGridSpec(
            num_scalar_prefetch=0,
            grid=(N, S // T, S // TK),
            in_specs=[
                pl.BlockSpec((None, 3, T), lambda n, j, k: (n, 0, j)),
                pl.BlockSpec((None, C, TK), lambda n, j, k: (n, 0, k)),
            ],
            out_specs=pl.BlockSpec((None, C, T), lambda n, j, k: (n, 0, j)),
            scratch_shapes=[pltpu.VMEM((C, T), jnp.float32)],
        ),
        compiler_params=pltpu.CompilerParams(
            dimension_semantics=("parallel", "parallel", "arbitrary"),
            vmem_limit_bytes=_vmem_limit_bytes(est),
        ),
    )(flow_3s, x_flat)


# ---------------------------------------------------------------------------
# public wrapper
# ---------------------------------------------------------------------------
def warp(x, flow_field, impl="auto"):
    """x: (N,C,D,H,W); flow_field: (N,D,H,W,3).  impl: 'auto'|'gather'|'matmul'.

    'auto' tries the O(C*S)-work gather kernel first (preferred: no wrapper
    flow transpose, in-kernel coords), then a gather variant fed by a
    pre-transposed (N,3,S) flow, then the K-tiled one-hot MXU kernel.  Call
    eagerly (not under an outer jit) so Mosaic lowering errors can be caught
    and the fallback selected; the broad `except Exception` is deliberate for
    that purpose.
    """
    if impl not in ("auto", "gather", "matmul"):
        raise ValueError(f"unknown impl: {impl}")
    N, C, D, H, W = x.shape
    S = D * H * W
    x_flat = x.reshape(N, C, S)
    flow_s3 = flow_field.reshape(N, S, 3)        # free reshape (row-major d,h,w)

    if impl in ("auto", "gather"):
        try:   # preferred: flow stays (N,S,3); (T,3)->(3,T) done in-kernel
            return _warp_gather(flow_s3, x_flat, D=D, H=H, W=W,
                                flow_sct=False).reshape(N, C, D, H, W)
        except Exception:
            pass   # lowering not available -> try the hedged layouts below

    flow_3s = jnp.transpose(flow_s3, (0, 2, 1))  # (N,3,S) lane-dense layout

    if impl in ("auto", "gather"):
        try:
            return _warp_gather(flow_3s, x_flat, D=D, H=H, W=W,
                                flow_sct=True).reshape(N, C, D, H, W)
        except Exception:
            if impl == "gather":
                raise

    return _warp_matmul(flow_3s, x_flat, D=D, H=H, W=W).reshape(N, C, D, H, W)


# ---------------------------------------------------------------------------
# pure-JAX reference (affine_grid(identity) + trilinear grid_sample, zeros pad)
# ---------------------------------------------------------------------------
def warp_ref(x, flow_field):
    N, C, D, H, W = x.shape
    S = D * H * W
    base_z = ((2.0 * jnp.arange(D) + 1.0) / D - 1.0)[:, None, None]
    base_y = ((2.0 * jnp.arange(H) + 1.0) / H - 1.0)[None, :, None]
    base_x = ((2.0 * jnp.arange(W) + 1.0) / W - 1.0)[None, None, :]
    gx = base_x + flow_field[..., 0]
    gy = base_y + flow_field[..., 1]
    gz = base_z + flow_field[..., 2]
    ix = ((gx + 1.0) * W - 1.0) * 0.5
    iy = ((gy + 1.0) * H - 1.0) * 0.5
    iz = ((gz + 1.0) * D - 1.0) * 0.5
    ix0f, iy0f, iz0f = jnp.floor(ix), jnp.floor(iy), jnp.floor(iz)
    fx, fy, fz = ix - ix0f, iy - iy0f, iz - iz0f
    ix0 = ix0f.astype(jnp.int32)
    iy0 = iy0f.astype(jnp.int32)
    iz0 = iz0f.astype(jnp.int32)
    x_flat = x.reshape(N, C, S)
    out = jnp.zeros_like(x)
    for dz in (0, 1):
        for dy in (0, 1):
            for dx in (0, 1):
                xi, yi, zi = ix0 + dx, iy0 + dy, iz0 + dz
                wgt = ((fx if dx else 1.0 - fx) *
                       (fy if dy else 1.0 - fy) *
                       (fz if dz else 1.0 - fz))
                valid = ((xi >= 0) & (xi < W) & (yi >= 0) & (yi < H) &
                         (zi >= 0) & (zi < D))
                wgt = jnp.where(valid, wgt, 0.0)
                idx = jnp.clip(zi * (H * W) + yi * W + xi, 0, S - 1)
                idx_b = jnp.broadcast_to(idx.reshape(N, 1, S), (N, C, S))
                vals = jnp.take_along_axis(x_flat, idx_b, axis=2)
                out = out + vals.reshape(N, C, D, H, W) * wgt[:, None, :, :, :]
    return out


if __name__ == "__main__":
    key = jax.random.PRNGKey(0)
    k_a, k_b = jax.random.split(key)

    configs = [
        # (key, N, C, D, H, W)
        (k_a, 2, 4, 2, 8, 8),   # S=128: single spatial tile
        (k_b, 2, 4, 4, 8, 8),   # S=256: 2 spatial tiles x 2 contraction tiles
    ]
    for kk, N, C, D, H, W in configs:
        k1, k2 = jax.random.split(kk)
        x = jax.random.normal(k1, (N, C, D, H, W), dtype=jnp.float32)
        flow_field = 0.2 * jax.random.normal(k2, (N, D, H, W, 3),
                                             dtype=jnp.float32)
        ref = warp_ref(x, flow_field)

        out = warp(x, flow_field, impl="auto")
        jax.block_until_ready(out)
        np.testing.assert_allclose(np.asarray(out), np.asarray(ref),
                                   rtol=1e-4, atol=1e-4)
        assert out.shape == x.shape and out.dtype == x.dtype

        out_mm = warp(x, flow_field, impl="matmul")   # exercise the MXU fallback
        jax.block_until_ready(out_mm)
        np.testing.assert_allclose(np.asarray(out_mm), np.asarray(ref),
                                   rtol=1e-4, atol=1e-4)

    print("KERNEL_OK")
</pallas_src>

<mosaic_0001>
module attributes {stable_mosaic.version = 11 : i64} {
  func.func @_warp_matmul_kernel(%arg0: i32, %arg1: i32, %arg2: i32, %arg3: memref<1x3x128xf32, #tpu.memory_space<vmem>>, %arg4: memref<1x4x128xf32, #tpu.memory_space<vmem>>, %arg5: memref<1x4x128xf32, #tpu.memory_space<vmem>>, %arg6: memref<4x128xf32, #tpu.memory_space<vmem>>) attributes {dimension_semantics = [#tpu.dimension_semantics<parallel>, #tpu.dimension_semantics<parallel>, #tpu.dimension_semantics<arbitrary>], iteration_bounds = array<i64: 2, 1, 1>, scalar_prefetch = 0 : i64, scratch_operands = 1 : i64, tpu.core_type = #tpu.core_type<tc>, window_params = [{transform_indices = @transform_0, window_bounds = array<i64: 1, 3, 128>}, {transform_indices = @transform_1, window_bounds = array<i64: 1, 4, 128>}, {transform_indices = @transform_2, window_bounds = array<i64: 1, 4, 128>}]} {
    %c0_i32 = arith.constant 0 : i32
    %0 = arith.cmpi eq, %arg2, %c0_i32 : i32
    %1 = arith.extui %0 : i1 to i32
    %c0_i32_0 = arith.constant 0 : i32
    %2 = arith.cmpi ne, %1, %c0_i32_0 : i32
    scf.if %2 {
      %cst_126 = arith.constant 0.000000e+00 : f32
      %389 = vector.broadcast %cst_126 : f32 to vector<4x128xf32>
      %c0_127 = arith.constant 0 : index
      %c0_128 = arith.constant 0 : index
      %390 = vector.load %arg6[%c0_127, %c0_128] : memref<4x128xf32, #tpu.memory_space<vmem>>, vector<4x128xf32>
      tpu.vector_store %arg6[%c0_127, %c0_128], %389 {strides = array<i32>} : memref<4x128xf32, #tpu.memory_space<vmem>>, vector<4x128xf32>,
    } else {
    }
    %c0 = arith.constant 0 : index
    %c0_1 = arith.constant 0 : index
    %c0_2 = arith.constant 0 : index
    %3 = vector.load %arg3[%c0, %c0_1, %c0_2] : memref<1x3x128xf32, #tpu.memory_space<vmem>>, vector<1x3x128xf32>
    %4 = vector.shape_cast %3 : vector<1x3x128xf32> to vector<3x128xf32>
    %5 = vector.extract_strided_slice %4 {offsets = [0, 0], sizes = [1, 128], strides = [1, 1]} : vector<3x128xf32> to vector<1x128xf32>
    %6 = vector.extract_strided_slice %4 {offsets = [1, 0], sizes = [1, 128], strides = [1, 1]} : vector<3x128xf32> to vector<1x128xf32>
    %7 = vector.extract_strided_slice %4 {offsets = [2, 0], sizes = [1, 128], strides = [1, 1]} : vector<3x128xf32> to vector<1x128xf32>
    %c128_i32 = arith.constant 128 : i32
    %8 = arith.muli %arg1, %c128_i32 : i32
    %9 = tpu.iota {dimensions = array<i32: 1>} : vector<1x128xi32>
    %10 = vector.broadcast %8 : i32 to vector<1x128xi32>
    %11 = arith.addi %9, %10 : vector<1x128xi32>
    %12 = arith.sitofp %11 : vector<1x128xi32> to vector<1x128xf32>
    %cst = arith.constant 5.000000e-01 : f32
    %13 = vector.broadcast %cst : f32 to vector<1x128xf32>
    %14 = arith.addf %12, %13 : vector<1x128xf32>
    %cst_3 = arith.constant 8.000000e+00 : f32
    %15 = vector.broadcast %cst_3 : f32 to vector<1x128xf32>
    %16 = arith.divf %14, %15 : vector<1x128xf32>
    %17 = math.floor %16 : vector<1x128xf32>
    %cst_4 = arith.constant 8.000000e+00 : f32
    %18 = vector.broadcast %cst_4 : f32 to vector<1x128xf32>
    %19 = arith.mulf %18, %17 : vector<1x128xf32>
    %20 = arith.subf %12, %19 : vector<1x128xf32>
    %cst_5 = arith.constant 5.000000e-01 : f32
    %21 = vector.broadcast %cst_5 : f32 to vector<1x128xf32>
    %22 = arith.addf %17, %21 : vector<1x128xf32>
    %cst_6 = arith.constant 8.000000e+00 : f32
    %23 = vector.broadcast %cst_6 : f32 to vector<1x128xf32>
    %24 = arith.divf %22, %23 : vector<1x128xf32>
    %25 = math.floor %24 : vector<1x128xf32>
    %cst_7 = arith.constant 8.000000e+00 : f32
    %26 = vector.broadcast %cst_7 : f32 to vector<1x128xf32>
    %27 = arith.mulf %26, %25 : vector<1x128xf32>
    %28 = arith.subf %17, %27 : vector<1x128xf32>
    %cst_8 = arith.constant 4.000000e+00 : f32
    %29 = vector.broadcast %cst_8 : f32 to vector<1x128xf32>
    %30 = arith.mulf %29, %5 : vector<1x128xf32>
    %31 = arith.addf %20, %30 : vector<1x128xf32>
    %cst_9 = arith.constant 4.000000e+00 : f32
    %32 = vector.broadcast %cst_9 : f32 to vector<1x128xf32>
    %33 = arith.mulf %32, %6 : vector<1x128xf32>
    %34 = arith.addf %28, %33 : vector<1x128xf32>
    %cst_10 = arith.constant 1.000000e+00 : f32
    %35 = vector.broadcast %cst_10 : f32 to vector<1x128xf32>
    %36 = arith.mulf %35, %7 : vector<1x128xf32>
    %37 = arith.addf %25, %36 : vector<1x128xf32>
    %38 = math.floor %31 : vector<1x128xf32>
    %39 = math.floor %34 : vector<1x128xf32>
    %40 = math.floor %37 : vector<1x128xf32>
    %41 = arith.fptosi %38 : vector<1x128xf32> to vector<1x128xi32>
    %42 = arith.fptosi %39 : vector<1x128xf32> to vector<1x128xi32>
    %43 = arith.fptosi %40 : vector<1x128xf32> to vector<1x128xi32>
    %44 = arith.subf %31, %38 : vector<1x128xf32>
    %45 = arith.subf %34, %39 : vector<1x128xf32>
    %46 = arith.subf %37, %40 : vector<1x128xf32>
    %47 = tpu.iota {dimensions = array<i32: 0>} : vector<128x128xi32>
    %c128_i32_11 = arith.constant 128 : i32
    %48 = arith.muli %arg2, %c128_i32_11 : i32
    %49 = vector.broadcast %48 : i32 to vector<128x128xi32>
    %50 = arith.addi %47, %49 : vector<128x128xi32>
    %cst_12 = arith.constant 0.000000e+00 : f32
    %51 = vector.broadcast %cst_12 : f32 to vector<128x128xf32>
    %c0_i32_13 = arith.constant 0 : i32
    %52 = vector.broadcast %c0_i32_13 : i32 to vector<1x128xi32>
    %53 = arith.addi %41, %52 : vector<1x128xi32>
    %c0_i32_14 = arith.constant 0 : i32
    %54 = vector.broadcast %c0_i32_14 : i32 to vector<1x128xi32>
    %55 = arith.addi %42, %54 : vector<1x128xi32>
    %c0_i32_15 = arith.constant 0 : i32
    %56 = vector.broadcast %c0_i32_15 : i32 to vector<1x128xi32>
    %57 = arith.addi %43, %56 : vector<1x128xi32>
    %cst_16 = arith.constant 1.000000e+00 : f32
    %58 = vector.broadcast %cst_16 : f32 to vector<1x128xf32>
    %59 = arith.subf %58, %44 : vector<1x128xf32>
    %cst_17 = arith.constant 1.000000e+00 : f32
    %60 = vector.broadcast %cst_17 : f32 to vector<1x128xf32>
    %61 = arith.subf %60, %45 : vector<1x128xf32>
    %62 = arith.mulf %59, %61 : vector<1x128xf32>
    %cst_18 = arith.constant 1.000000e+00 : f32
    %63 = vector.broadcast %cst_18 : f32 to vector<1x128xf32>
    %64 = arith.subf %63, %46 : vector<1x128xf32>
    %65 = arith.mulf %62, %64 : vector<1x128xf32>
    %c0_i32_19 = arith.constant 0 : i32
    %66 = vector.broadcast %c0_i32_19 : i32 to vector<1x128xi32>
    %67 = arith.cmpi sge, %53, %66 : vector<1x128xi32>
    %c8_i32 = arith.constant 8 : i32
    %68 = vector.broadcast %c8_i32 : i32 to vector<1x128xi32>
    %69 = arith.cmpi slt, %53, %68 : vector<1x128xi32>
    %70 = arith.andi %67, %69 : vector<1x128xi1>
    %c0_i32_20 = arith.constant 0 : i32
    %71 = vector.broadcast %c0_i32_20 : i32 to vector<1x128xi32>
    %72 = arith.cmpi sge, %55, %71 : vector<1x128xi32>
    %73 = arith.andi %70, %72 : vector<1x128xi1>
    %c8_i32_21 = arith.constant 8 : i32
    %74 = vector.broadcast %c8_i32_21 : i32 to vector<1x128xi32>
    %75 = arith.cmpi slt, %55, %74 : vector<1x128xi32>
    %76 = arith.andi %73, %75 : vector<1x128xi1>
    %c0_i32_22 = arith.constant 0 : i32
    %77 = vector.broadcast %c0_i32_22 : i32 to vector<1x128xi32>
    %78 = arith.cmpi sge, %57, %77 : vector<1x128xi32>
    %79 = arith.andi %76, %78 : vector<1x128xi1>
    %c2_i32 = arith.constant 2 : i32
    %80 = vector.broadcast %c2_i32 : i32 to vector<1x128xi32>
    %81 = arith.cmpi slt, %57, %80 : vector<1x128xi32>
    %82 = arith.andi %79, %81 : vector<1x128xi1>
    %c64_i32 = arith.constant 64 : i32
    %83 = vector.broadcast %c64_i32 : i32 to vector<1x128xi32>
    %84 = arith.muli %57, %83 : vector<1x128xi32>
    %c8_i32_23 = arith.constant 8 : i32
    %85 = vector.broadcast %c8_i32_23 : i32 to vector<1x128xi32>
    %86 = arith.muli %55, %85 : vector<1x128xi32>
    %87 = arith.addi %84, %86 : vector<1x128xi32>
    %88 = arith.addi %87, %53 : vector<1x128xi32>
    %c-1_i32 = arith.constant -1 : i32
    %89 = vector.broadcast %c-1_i32 : i32 to vector<1x128xi32>
    %90 = arith.select %82, %88, %89 : vector<1x128xi1>, vector<1x128xi32>
    %91 = vector.broadcast %90 : vector<1x128xi32> to vector<128x128xi32>
    %92 = arith.cmpi eq, %50, %91 : vector<128x128xi32>
    %93 = vector.shape_cast %65 : vector<1x128xf32> to vector<1x128xf32>
    %94 = vector.broadcast %93 : vector<1x128xf32> to vector<128x128xf32>
    %95 = arith.select %92, %94, %51 : vector<128x128xi1>, vector<128x128xf32>
    %c1_i32 = arith.constant 1 : i32
    %96 = vector.broadcast %c1_i32 : i32 to vector<1x128xi32>
    %97 = arith.addi %41, %96 : vector<1x128xi32>
    %c0_i32_24 = arith.constant 0 : i32
    %98 = vector.broadcast %c0_i32_24 : i32 to vector<1x128xi32>
    %99 = arith.addi %42, %98 : vector<1x128xi32>
    %c0_i32_25 = arith.constant 0 : i32
    %100 = vector.broadcast %c0_i32_25 : i32 to vector<1x128xi32>
    %101 = arith.addi %43, %100 : vector<1x128xi32>
    %cst_26 = arith.constant 1.000000e+00 : f32
    %102 = vector.broadcast %cst_26 : f32 to vector<1x128xf32>
    %103 = arith.subf %102, %45 : vector<1x128xf32>
    %104 = arith.mulf %44, %103 : vector<1x128xf32>
    %cst_27 = arith.constant 1.000000e+00 : f32
    %105 = vector.broadcast %cst_27 : f32 to vector<1x128xf32>
    %106 = arith.subf %105, %46 : vector<1x128xf32>
    %107 = arith.mulf %104, %106 : vector<1x128xf32>
    %c0_i32_28 = arith.constant 0 : i32
    %108 = vector.broadcast %c0_i32_28 : i32 to vector<1x128xi32>
    %109 = arith.cmpi sge, %97, %108 : vector<1x128xi32>
    %c8_i32_29 = arith.constant 8 : i32
    %110 = vector.broadcast %c8_i32_29 : i32 to vector<1x128xi32>
    %111 = arith.cmpi slt, %97, %110 : vector<1x128xi32>
    %112 = arith.andi %109, %111 : vector<1x128xi1>
    %c0_i32_30 = arith.constant 0 : i32
    %113 = vector.broadcast %c0_i32_30 : i32 to vector<1x128xi32>
    %114 = arith.cmpi sge, %99, %113 : vector<1x128xi32>
    %115 = arith.andi %112, %114 : vector<1x128xi1>
    %c8_i32_31 = arith.constant 8 : i32
    %116 = vector.broadcast %c8_i32_31 : i32 to vector<1x128xi32>
    %117 = arith.cmpi slt, %99, %116 : vector<1x128xi32>
    %118 = arith.andi %115, %117 : vector<1x128xi1>
    %c0_i32_32 = arith.constant 0 : i32
    %119 = vector.broadcast %c0_i32_32 : i32 to vector<1x128xi32>
    %120 = arith.cmpi sge, %101, %119 : vector<1x128xi32>
    %121 = arith.andi %118, %120 : vector<1x128xi1>
    %c2_i32_33 = arith.constant 2 : i32
    %122 = vector.broadcast %c2_i32_33 : i32 to vector<1x128xi32>
    %123 = arith.cmpi slt, %101, %122 : vector<1x128xi32>
    %124 = arith.andi %121, %123 : vector<1x128xi1>
    %c64_i32_34 = arith.constant 64 : i32
    %125 = vector.broadcast %c64_i32_34 : i32 to vector<1x128xi32>
    %126 = arith.muli %101, %125 : vector<1x128xi32>
    %c8_i32_35 = arith.constant 8 : i32
    %127 = vector.broadcast %c8_i32_35 : i32 to vector<1x128xi32>
    %128 = arith.muli %99, %127 : vector<1x128xi32>
    %129 = arith.addi %126, %128 : vector<1x128xi32>
    %130 = arith.addi %129, %97 : vector<1x128xi32>
    %c-1_i32_36 = arith.constant -1 : i32
    %131 = vector.broadcast %c-1_i32_36 : i32 to vector<1x128xi32>
    %132 = arith.select %124, %130, %131 : vector<1x128xi1>, vector<1x128xi32>
    %133 = vector.broadcast %132 : vector<1x128xi32> to vector<128x128xi32>
    %134 = arith.cmpi eq, %50, %133 : vector<128x128xi32>
    %135 = vector.shape_cast %107 : vector<1x128xf32> to vector<1x128xf32>
    %136 = vector.broadcast %135 : vector<1x128xf32> to vector<128x128xf32>
    %137 = arith.select %134, %136, %95 : vector<128x128xi1>, vector<128x128xf32>
    %c0_i32_37 = arith.constant 0 : i32
    %138 = vector.broadcast %c0_i32_37 : i32 to vector<1x128xi32>
    %139 = arith.addi %41, %138 : vector<1x128xi32>
    %c1_i32_38 = arith.constant 1 : i32
    %140 = vector.broadcast %c1_i32_38 : i32 to vector<1x128xi32>
    %141 = arith.addi %42, %140 : vector<1x128xi32>
    %c0_i32_39 = arith.constant 0 : i32
    %142 = vector.broadcast %c0_i32_39 : i32 to vector<1x128xi32>
    %143 = arith.addi %43, %142 : vector<1x128xi32>
    %cst_40 = arith.constant 1.000000e+00 : f32
    %144 = vector.broadcast %cst_40 : f32 to vector<1x128xf32>
    %145 = arith.subf %144, %44 : vector<1x128xf32>
    %146 = arith.mulf %145, %45 : vector<1x128xf32>
    %cst_41 = arith.constant 1.000000e+00 : f32
    %147 = vector.broadcast %cst_41 : f32 to vector<1x128xf32>
    %148 = arith.subf %147, %46 : vector<1x128xf32>
    %149 = arith.mulf %146, %148 : vector<1x128xf32>
    %c0_i32_42 = arith.constant 0 : i32
    %150 = vector.broadcast %c0_i32_42 : i32 to vector<1x128xi32>
    %151 = arith.cmpi sge, %139, %150 : vector<1x128xi32>
    %c8_i32_43 = arith.constant 8 : i32
    %152 = vector.broadcast %c8_i32_43 : i32 to vector<1x128xi32>
    %153 = arith.cmpi slt, %139, %152 : vector<1x128xi32>
    %154 = arith.andi %151, %153 : vector<1x128xi1>
    %c0_i32_44 = arith.constant 0 : i32
    %155 = vector.broadcast %c0_i32_44 : i32 to vector<1x128xi32>
    %156 = arith.cmpi sge, %141, %155 : vector<1x128xi32>
    %157 = arith.andi %154, %156 : vector<1x128xi1>
    %c8_i32_45 = arith.constant 8 : i32
    %158 = vector.broadcast %c8_i32_45 : i32 to vector<1x128xi32>
    %159 = arith.cmpi slt, %141, %158 : vector<1x128xi32>
    %160 = arith.andi %157, %159 : vector<1x128xi1>
    %c0_i32_46 = arith.constant 0 : i32
    %161 = vector.broadcast %c0_i32_46 : i32 to vector<1x128xi32>
    %162 = arith.cmpi sge, %143, %161 : vector<1x128xi32>
    %163 = arith.andi %160, %162 : vector<1x128xi1>
    %c2_i32_47 = arith.constant 2 : i32
    %164 = vector.broadcast %c2_i32_47 : i32 to vector<1x128xi32>
    %165 = arith.cmpi slt, %143, %164 : vector<1x128xi32>
    %166 = arith.andi %163, %165 : vector<1x128xi1>
    %c64_i32_48 = arith.constant 64 : i32
    %167 = vector.broadcast %c64_i32_48 : i32 to vector<1x128xi32>
    %168 = arith.muli %143, %167 : vector<1x128xi32>
    %c8_i32_49 = arith.constant 8 : i32
    %169 = vector.broadcast %c8_i32_49 : i32 to vector<1x128xi32>
    %170 = arith.muli %141, %169 : vector<1x128xi32>
    %171 = arith.addi %168, %170 : vector<1x128xi32>
    %172 = arith.addi %171, %139 : vector<1x128xi32>
    %c-1_i32_50 = arith.constant -1 : i32
    %173 = vector.broadcast %c-1_i32_50 : i32 to vector<1x128xi32>
    %174 = arith.select %166, %172, %173 : vector<1x128xi1>, vector<1x128xi32>
    %175 = vector.broadcast %174 : vector<1x128xi32> to vector<128x128xi32>
    %176 = arith.cmpi eq, %50, %175 : vector<128x128xi32>
    %177 = vector.shape_cast %149 : vector<1x128xf32> to vector<1x128xf32>
    %178 = vector.broadcast %177 : vector<1x128xf32> to vector<128x128xf32>
    %179 = arith.select %176, %178, %137 : vector<128x128xi1>, vector<128x128xf32>
    %c1_i32_51 = arith.constant 1 : i32
    %180 = vector.broadcast %c1_i32_51 : i32 to vector<1x128xi32>
    %181 = arith.addi %41, %180 : vector<1x128xi32>
    %c1_i32_52 = arith.constant 1 : i32
    %182 = vector.broadcast %c1_i32_52 : i32 to vector<1x128xi32>
    %183 = arith.addi %42, %182 : vector<1x128xi32>
    %c0_i32_53 = arith.constant 0 : i32
    %184 = vector.broadcast %c0_i32_53 : i32 to vector<1x128xi32>
    %185 = arith.addi %43, %184 : vector<1x128xi32>
    %186 = arith.mulf %44, %45 : vector<1x128xf32>
    %cst_54 = arith.constant 1.000000e+00 : f32
    %187 = vector.broadcast %cst_54 : f32 to vector<1x128xf32>
    %188 = arith.subf %187, %46 : vector<1x128xf32>
    %189 = arith.mulf %186, %188 : vector<1x128xf32>
    %c0_i32_55 = arith.constant 0 : i32
    %190 = vector.broadcast %c0_i32_55 : i32 to vector<1x128xi32>
    %191 = arith.cmpi sge, %181, %190 : vector<1x128xi32>
    %c8_i32_56 = arith.constant 8 : i32
    %192 = vector.broadcast %c8_i32_56 : i32 to vector<1x128xi32>
    %193 = arith.cmpi slt, %181, %192 : vector<1x128xi32>
    %194 = arith.andi %191, %193 : vector<1x128xi1>
    %c0_i32_57 = arith.constant 0 : i32
    %195 = vector.broadcast %c0_i32_57 : i32 to vector<1x128xi32>
    %196 = arith.cmpi sge, %183, %195 : vector<1x128xi32>
    %197 = arith.andi %194, %196 : vector<1x128xi1>
    %c8_i32_58 = arith.constant 8 : i32
    %198 = vector.broadcast %c8_i32_58 : i32 to vector<1x128xi32>
    %199 = arith.cmpi slt, %183, %198 : vector<1x128xi32>
    %200 = arith.andi %197, %199 : vector<1x128xi1>
    %c0_i32_59 = arith.constant 0 : i32
    %201 = vector.broadcast %c0_i32_59 : i32 to vector<1x128xi32>
    %202 = arith.cmpi sge, %185, %201 : vector<1x128xi32>
    %203 = arith.andi %200, %202 : vector<1x128xi1>
    %c2_i32_60 = arith.constant 2 : i32
    %204 = vector.broadcast %c2_i32_60 : i32 to vector<1x128xi32>
    %205 = arith.cmpi slt, %185, %204 : vector<1x128xi32>
    %206 = arith.andi %203, %205 : vector<1x128xi1>
    %c64_i32_61 = arith.constant 64 : i32
    %207 = vector.broadcast %c64_i32_61 : i32 to vector<1x128xi32>
    %208 = arith.muli %185, %207 : vector<1x128xi32>
    %c8_i32_62 = arith.constant 8 : i32
    %209 = vector.broadcast %c8_i32_62 : i32 to vector<1x128xi32>
    %210 = arith.muli %183, %209 : vector<1x128xi32>
    %211 = arith.addi %208, %210 : vector<1x128xi32>
    %212 = arith.addi %211, %181 : vector<1x128xi32>
    %c-1_i32_63 = arith.constant -1 : i32
    %213 = vector.broadcast %c-1_i32_63 : i32 to vector<1x128xi32>
    %214 = arith.select %206, %212, %213 : vector<1x128xi1>, vector<1x128xi32>
    %215 = vector.broadcast %214 : vector<1x128xi32> to vector<128x128xi32>
    %216 = arith.cmpi eq, %50, %215 : vector<128x128xi32>
    %217 = vector.shape_cast %189 : vector<1x128xf32> to vector<1x128xf32>
    %218 = vector.broadcast %217 : vector<1x128xf32> to vector<128x128xf32>
    %219 = arith.select %216, %218, %179 : vector<128x128xi1>, vector<128x128xf32>
    %c0_i32_64 = arith.constant 0 : i32
    %220 = vector.broadcast %c0_i32_64 : i32 to vector<1x128xi32>
    %221 = arith.addi %41, %220 : vector<1x128xi32>
    %c0_i32_65 = arith.constant 0 : i32
    %222 = vector.broadcast %c0_i32_65 : i32 to vector<1x128xi32>
    %223 = arith.addi %42, %222 : vector<1x128xi32>
    %c1_i32_66 = arith.constant 1 : i32
    %224 = vector.broadcast %c1_i32_66 : i32 to vector<1x128xi32>
    %225 = arith.addi %43, %224 : vector<1x128xi32>
    %cst_67 = arith.constant 1.000000e+00 : f32
    %226 = vector.broadcast %cst_67 : f32 to vector<1x128xf32>
    %227 = arith.subf %226, %44 : vector<1x128xf32>
    %cst_68 = arith.constant 1.000000e+00 : f32
    %228 = vector.broadcast %cst_68 : f32 to vector<1x128xf32>
    %229 = arith.subf %228, %45 : vector<1x128xf32>
    %230 = arith.mulf %227, %229 : vector<1x128xf32>
    %231 = arith.mulf %230, %46 : vector<1x128xf32>
    %c0_i32_69 = arith.constant 0 : i32
    %232 = vector.broadcast %c0_i32_69 : i32 to vector<1x128xi32>
    %233 = arith.cmpi sge, %221, %232 : vector<1x128xi32>
    %c8_i32_70 = arith.constant 8 : i32
    %234 = vector.broadcast %c8_i32_70 : i32 to vector<1x128xi32>
    %235 = arith.cmpi slt, %221, %234 : vector<1x128xi32>
    %236 = arith.andi %233, %235 : vector<1x128xi1>
    %c0_i32_71 = arith.constant 0 : i32
    %237 = vector.broadcast %c0_i32_71 : i32 to vector<1x128xi32>
    %238 = arith.cmpi sge, %223, %237 : vector<1x128xi32>
    %239 = arith.andi %236, %238 : vector<1x128xi1>
    %c8_i32_72 = arith.constant 8 : i32
    %240 = vector.broadcast %c8_i32_72 : i32 to vector<1x128xi32>
    %241 = arith.cmpi slt, %223, %240 : vector<1x128xi32>
    %242 = arith.andi %239, %241 : vector<1x128xi1>
    %c0_i32_73 = arith.constant 0 : i32
    %243 = vector.broadcast %c0_i32_73 : i32 to vector<1x128xi32>
    %244 = arith.cmpi sge, %225, %243 : vector<1x128xi32>
    %245 = arith.andi %242, %244 : vector<1x128xi1>
    %c2_i32_74 = arith.constant 2 : i32
    %246 = vector.broadcast %c2_i32_74 : i32 to vector<1x128xi32>
    %247 = arith.cmpi slt, %225, %246 : vector<1x128xi32>
    %248 = arith.andi %245, %247 : vector<1x128xi1>
    %c64_i32_75 = arith.constant 64 : i32
    %249 = vector.broadcast %c64_i32_75 : i32 to vector<1x128xi32>
    %250 = arith.muli %225, %249 : vector<1x128xi32>
    %c8_i32_76 = arith.constant 8 : i32
    %251 = vector.broadcast %c8_i32_76 : i32 to vector<1x128xi32>
    %252 = arith.muli %223, %251 : vector<1x128xi32>
    %253 = arith.addi %250, %252 : vector<1x128xi32>
    %254 = arith.addi %253, %221 : vector<1x128xi32>
    %c-1_i32_77 = arith.constant -1 : i32
    %255 = vector.broadcast %c-1_i32_77 : i32 to vector<1x128xi32>
    %256 = arith.select %248, %254, %255 : vector<1x128xi1>, vector<1x128xi32>
    %257 = vector.broadcast %256 : vector<1x128xi32> to vector<128x128xi32>
    %258 = arith.cmpi eq, %50, %257 : vector<128x128xi32>
    %259 = vector.shape_cast %231 : vector<1x128xf32> to vector<1x128xf32>
    %260 = vector.broadcast %259 : vector<1x128xf32> to vector<128x128xf32>
    %261 = arith.select %258, %260, %219 : vector<128x128xi1>, vector<128x128xf32>
    %c1_i32_78 = arith.constant 1 : i32
    %262 = vector.broadcast %c1_i32_78 : i32 to vector<1x128xi32>
    %263 = arith.addi %41, %262 : vector<1x128xi32>
    %c0_i32_79 = arith.constant 0 : i32
    %264 = vector.broadcast %c0_i32_79 : i32 to vector<1x128xi32>
    %265 = arith.addi %42, %264 : vector<1x128xi32>
    %c1_i32_80 = arith.constant 1 : i32
    %266 = vector.broadcast %c1_i32_80 : i32 to vector<1x128xi32>
    %267 = arith.addi %43, %266 : vector<1x128xi32>
    %cst_81 = arith.constant 1.000000e+00 : f32
    %268 = vector.broadcast %cst_81 : f32 to vector<1x128xf32>
    %269 = arith.subf %268, %45 : vector<1x128xf32>
    %270 = arith.mulf %44, %269 : vector<1x128xf32>
    %271 = arith.mulf %270, %46 : vector<1x128xf32>
    %c0_i32_82 = arith.constant 0 : i32
    %272 = vector.broadcast %c0_i32_82 : i32 to vector<1x128xi32>
    %273 = arith.cmpi sge, %263, %272 : vector<1x128xi32>
    %c8_i32_83 = arith.constant 8 : i32
    %274 = vector.broadcast %c8_i32_83 : i32 to vector<1x128xi32>
    %275 = arith.cmpi slt, %263, %274 : vector<1x128xi32>
    %276 = arith.andi %273, %275 : vector<1x128xi1>
    %c0_i32_84 = arith.constant 0 : i32
    %277 = vector.broadcast %c0_i32_84 : i32 to vector<1x128xi32>
    %278 = arith.cmpi sge, %265, %277 : vector<1x128xi32>
    %279 = arith.andi %276, %278 : vector<1x128xi1>
    %c8_i32_85 = arith.constant 8 : i32
    %280 = vector.broadcast %c8_i32_85 : i32 to vector<1x128xi32>
    %281 = arith.cmpi slt, %265, %280 : vector<1x128xi32>
    %282 = arith.andi %279, %281 : vector<1x128xi1>
    %c0_i32_86 = arith.constant 0 : i32
    %283 = vector.broadcast %c0_i32_86 : i32 to vector<1x128xi32>
    %284 = arith.cmpi sge, %267, %283 : vector<1x128xi32>
    %285 = arith.andi %282, %284 : vector<1x128xi1>
    %c2_i32_87 = arith.constant 2 : i32
    %286 = vector.broadcast %c2_i32_87 : i32 to vector<1x128xi32>
    %287 = arith.cmpi slt, %267, %286 : vector<1x128xi32>
    %288 = arith.andi %285, %287 : vector<1x128xi1>
    %c64_i32_88 = arith.constant 64 : i32
    %289 = vector.broadcast %c64_i32_88 : i32 to vector<1x128xi32>
    %290 = arith.muli %267, %289 : vector<1x128xi32>
    %c8_i32_89 = arith.constant 8 : i32
    %291 = vector.broadcast %c8_i32_89 : i32 to vector<1x128xi32>
    %292 = arith.muli %265, %291 : vector<1x128xi32>
    %293 = arith.addi %290, %292 : vector<1x128xi32>
    %294 = arith.addi %293, %263 : vector<1x128xi32>
    %c-1_i32_90 = arith.constant -1 : i32
    %295 = vector.broadcast %c-1_i32_90 : i32 to vector<1x128xi32>
    %296 = arith.select %288, %294, %295 : vector<1x128xi1>, vector<1x128xi32>
    %297 = vector.broadcast %296 : vector<1x128xi32> to vector<128x128xi32>
    %298 = arith.cmpi eq, %50, %297 : vector<128x128xi32>
    %299 = vector.shape_cast %271 : vector<1x128xf32> to vector<1x128xf32>
    %300 = vector.broadcast %299 : vector<1x128xf32> to vector<128x128xf32>
    %301 = arith.select %298, %300, %261 : vector<128x128xi1>, vector<128x128xf32>
    %c0_i32_91 = arith.constant 0 : i32
    %302 = vector.broadcast %c0_i32_91 : i32 to vector<1x128xi32>
    %303 = arith.addi %41, %302 : vector<1x128xi32>
    %c1_i32_92 = arith.constant 1 : i32
    %304 = vector.broadcast %c1_i32_92 : i32 to vector<1x128xi32>
    %305 = arith.addi %42, %304 : vector<1x128xi32>
    %c1_i32_93 = arith.constant 1 : i32
    %306 = vector.broadcast %c1_i32_93 : i32 to vector<1x128xi32>
    %307 = arith.addi %43, %306 : vector<1x128xi32>
    %cst_94 = arith.constant 1.000000e+00 : f32
    %308 = vector.broadcast %cst_94 : f32 to vector<1x128xf32>
    %309 = arith.subf %308, %44 : vector<1x128xf32>
    %310 = arith.mulf %309, %45 : vector<1x128xf32>
    %311 = arith.mulf %310, %46 : vector<1x128xf32>
    %c0_i32_95 = arith.constant 0 : i32
    %312 = vector.broadcast %c0_i32_95 : i32 to vector<1x128xi32>
    %313 = arith.cmpi sge, %303, %312 : vector<1x128xi32>
    %c8_i32_96 = arith.constant 8 : i32
    %314 = vector.broadcast %c8_i32_96 : i32 to vector<1x128xi32>
    %315 = arith.cmpi slt, %303, %314 : vector<1x128xi32>
    %316 = arith.andi %313, %315 : vector<1x128xi1>
    %c0_i32_97 = arith.constant 0 : i32
    %317 = vector.broadcast %c0_i32_97 : i32 to vector<1x128xi32>
    %318 = arith.cmpi sge, %305, %317 : vector<1x128xi32>
    %319 = arith.andi %316, %318 : vector<1x128xi1>
    %c8_i32_98 = arith.constant 8 : i32
    %320 = vector.broadcast %c8_i32_98 : i32 to vector<1x128xi32>
    %321 = arith.cmpi slt, %305, %320 : vector<1x128xi32>
    %322 = arith.andi %319, %321 : vector<1x128xi1>
    %c0_i32_99 = arith.constant 0 : i32
    %323 = vector.broadcast %c0_i32_99 : i32 to vector<1x128xi32>
    %324 = arith.cmpi sge, %307, %323 : vector<1x128xi32>
    %325 = arith.andi %322, %324 : vector<1x128xi1>
    %c2_i32_100 = arith.constant 2 : i32
    %326 = vector.broadcast %c2_i32_100 : i32 to vector<1x128xi32>
    %327 = arith.cmpi slt, %307, %326 : vector<1x128xi32>
    %328 = arith.andi %325, %327 : vector<1x128xi1>
    %c64_i32_101 = arith.constant 64 : i32
    %329 = vector.broadcast %c64_i32_101 : i32 to vector<1x128xi32>
    %330 = arith.muli %307, %329 : vector<1x128xi32>
    %c8_i32_102 = arith.constant 8 : i32
    %331 = vector.broadcast %c8_i32_102 : i32 to vector<1x128xi32>
    %332 = arith.muli %305, %331 : vector<1x128xi32>
    %333 = arith.addi %330, %332 : vector<1x128xi32>
    %334 = arith.addi %333, %303 : vector<1x128xi32>
    %c-1_i32_103 = arith.constant -1 : i32
    %335 = vector.broadcast %c-1_i32_103 : i32 to vector<1x128xi32>
    %336 = arith.select %328, %334, %335 : vector<1x128xi1>, vector<1x128xi32>
    %337 = vector.broadcast %336 : vector<1x128xi32> to vector<128x128xi32>
    %338 = arith.cmpi eq, %50, %337 : vector<128x128xi32>
    %339 = vector.shape_cast %311 : vector<1x128xf32> to vector<1x128xf32>
    %340 = vector.broadcast %339 : vector<1x128xf32> to vector<128x128xf32>
    %341 = arith.select %338, %340, %301 : vector<128x128xi1>, vector<128x128xf32>
    %c1_i32_104 = arith.constant 1 : i32
    %342 = vector.broadcast %c1_i32_104 : i32 to vector<1x128xi32>
    %343 = arith.addi %41, %342 : vector<1x128xi32>
    %c1_i32_105 = arith.constant 1 : i32
    %344 = vector.broadcast %c1_i32_105 : i32 to vector<1x128xi32>
    %345 = arith.addi %42, %344 : vector<1x128xi32>
    %c1_i32_106 = arith.constant 1 : i32
    %346 = vector.broadcast %c1_i32_106 : i32 to vector<1x128xi32>
    %347 = arith.addi %43, %346 : vector<1x128xi32>
    %348 = arith.mulf %44, %45 : vector<1x128xf32>
    %349 = arith.mulf %348, %46 : vector<1x128xf32>
    %c0_i32_107 = arith.constant 0 : i32
    %350 = vector.broadcast %c0_i32_107 : i32 to vector<1x128xi32>
    %351 = arith.cmpi sge, %343, %350 : vector<1x128xi32>
    %c8_i32_108 = arith.constant 8 : i32
    %352 = vector.broadcast %c8_i32_108 : i32 to vector<1x128xi32>
    %353 = arith.cmpi slt, %343, %352 : vector<1x128xi32>
    %354 = arith.andi %351, %353 : vector<1x128xi1>
    %c0_i32_109 = arith.constant 0 : i32
    %355 = vector.broadcast %c0_i32_109 : i32 to vector<1x128xi32>
    %356 = arith.cmpi sge, %345, %355 : vector<1x128xi32>
    %357 = arith.andi %354, %356 : vector<1x128xi1>
    %c8_i32_110 = arith.constant 8 : i32
    %358 = vector.broadcast %c8_i32_110 : i32 to vector<1x128xi32>
    %359 = arith.cmpi slt, %345, %358 : vector<1x128xi32>
    %360 = arith.andi %357, %359 : vector<1x128xi1>
    %c0_i32_111 = arith.constant 0 : i32
    %361 = vector.broadcast %c0_i32_111 : i32 to vector<1x128xi32>
    %362 = arith.cmpi sge, %347, %361 : vector<1x128xi32>
    %363 = arith.andi %360, %362 : vector<1x128xi1>
    %c2_i32_112 = arith.constant 2 : i32
    %364 = vector.broadcast %c2_i32_112 : i32 to vector<1x128xi32>
    %365 = arith.cmpi slt, %347, %364 : vector<1x128xi32>
    %366 = arith.andi %363, %365 : vector<1x128xi1>
    %c64_i32_113 = arith.constant 64 : i32
    %367 = vector.broadcast %c64_i32_113 : i32 to vector<1x128xi32>
    %368 = arith.muli %347, %367 : vector<1x128xi32>
    %c8_i32_114 = arith.constant 8 : i32
    %369 = vector.broadcast %c8_i32_114 : i32 to vector<1x128xi32>
    %370 = arith.muli %345, %369 : vector<1x128xi32>
    %371 = arith.addi %368, %370 : vector<1x128xi32>
    %372 = arith.addi %371, %343 : vector<1x128xi32>
    %c-1_i32_115 = arith.constant -1 : i32
    %373 = vector.broadcast %c-1_i32_115 : i32 to vector<1x128xi32>
    %374 = arith.select %366, %372, %373 : vector<1x128xi1>, vector<1x128xi32>
    %375 = vector.broadcast %374 : vector<1x128xi32> to vector<128x128xi32>
    %376 = arith.cmpi eq, %50, %375 : vector<128x128xi32>
    %377 = vector.shape_cast %349 : vector<1x128xf32> to vector<1x128xf32>
    %378 = vector.broadcast %377 : vector<1x128xf32> to vector<128x128xf32>
    %379 = arith.select %376, %378, %341 : vector<128x128xi1>, vector<128x128xf32>
    %c0_116 = arith.constant 0 : index
    %c0_117 = arith.constant 0 : index
    %380 = vector.load %arg6[%c0_116, %c0_117] : memref<4x128xf32, #tpu.memory_space<vmem>>, vector<4x128xf32>
    %c0_118 = arith.constant 0 : index
    %c0_119 = arith.constant 0 : index
    %c0_120 = arith.constant 0 : index
    %381 = vector.load %arg4[%c0_118, %c0_119, %c0_120] : memref<1x4x128xf32, #tpu.memory_space<vmem>>, vector<1x4x128xf32>
    %382 = vector.shape_cast %381 : vector<1x4x128xf32> to vector<4x128xf32>
    %cst_121 = arith.constant dense<0.000000e+00> : vector<4x128xf32>
    %383 = tpu.matmul %382, %379, %cst_121 {dimension_numbers = #tpu.dot_dimension_numbers<[1], [0], [0], [1], [0, 0, 1, 1], [], []>, precision = #tpu.contract_precision<fp32>} : vector<4x128xf32>, vector<128x128xf32>, vector<4x128xf32> -> vector<4x128xf32>
    %384 = arith.addf %380, %383 : vector<4x128xf32>
    %c0_122 = arith.constant 0 : index
    %c0_123 = arith.constant 0 : index
    %385 = vector.load %arg6[%c0_122, %c0_123] : memref<4x128xf32, #tpu.memory_space<vmem>>, vector<4x128xf32>
    tpu.vector_store %arg6[%c0_122, %c0_123], %384 {strides = array<i32>} : memref<4x128xf32, #tpu.memory_space<vmem>>, vector<4x128xf32>,
    %c0_i32_124 = arith.constant 0 : i32
    %386 = arith.cmpi eq, %arg2, %c0_i32_124 : i32
    %387 = arith.extui %386 : i1 to i32
    %c0_i32_125 = arith.constant 0 : i32
    %388 = arith.cmpi ne, %387, %c0_i32_125 : i32
    scf.if %388 {
      %c0_126 = arith.constant 0 : index
      %c0_127 = arith.constant 0 : index
      %389 = vector.load %arg6[%c0_126, %c0_127] : memref<4x128xf32, #tpu.memory_space<vmem>>, vector<4x128xf32>
      %c0_128 = arith.constant 0 : index
      %c0_129 = arith.constant 0 : index
      %c0_130 = arith.constant 0 : index
      %390 = vector.load %arg5[%c0_128, %c0_129, %c0_130] : memref<1x4x128xf32, #tpu.memory_space<vmem>>, vector<1x4x128xf32>
      %391 = vector.shape_cast %390 : vector<1x4x128xf32> to vector<4x128xf32>
      %392 = vector.shape_cast %389 : vector<4x128xf32> to vector<1x4x128xf32>
      tpu.vector_store %arg5[%c0_128, %c0_129, %c0_130], %392 {strides = array<i32>} : memref<1x4x128xf32, #tpu.memory_space<vmem>>, vector<1x4x128xf32>,
    } else {
    }
    return
  }
  func.func @transform_0(%arg0: i32, %arg1: i32, %arg2: i32) -> (i32, i32, i32) {
    %c0_i32 = arith.constant 0 : i32
    %c0_i32_0 = arith.constant 0 : i32
    return %arg0, %c0_i32, %arg1 : i32, i32, i32
  }
  func.func @transform_1(%arg0: i32, %arg1: i32, %arg2: i32) -> (i32, i32, i32) {
    %c0_i32 = arith.constant 0 : i32
    %c0_i32_0 = arith.constant 0 : i32
    return %arg0, %c0_i32, %arg2 : i32, i32, i32
  }
  func.func @transform_2(%arg0: i32, %arg1: i32, %arg2: i32) -> (i32, i32, i32) {
    %c0_i32 = arith.constant 0 : i32
    %c0_i32_0 = arith.constant 0 : i32
    return %arg0, %c0_i32, %arg1 : i32, i32, i32
  }
}

</mosaic_0001>

<bundles_post_ra>
// kernel: tpu_custom_call.1
= control target key start
LH: loop header
LB: loop body
LE: loop exit
PB: predicated region body
PF: predicated region fallthrough
CT: control target
= control target key end

     0   :  { %7 = vsyncpa [#allocation4], 0  ;;  %s3151_s0 = inlined_call_operand.vmem [shape: f32[2,3,128], index: 0, kind: input, shape index: {}]   ;;  %s3152_s1 = inlined_call_operand.vmem [shape: f32[2,4,128], index: 1, kind: input, shape index: {}]   ;;  %s3153_s2 = inlined_call_operand.hbm [shape: f32[2,4,128], index: 2, kind: output, shape index: {}]  }
   0x1   :  { %9 = vsyncpa [#allocation4 + $0x1], 0  ;;  %s2105_s9 = smov 0   ;;  %s2107_s10 = smov 0  }
   0x2   :  { %s2109_s11 = smov 0   ;;  %s2111_s12 = smov 0  }
   0x3   :  { %s2113_s13 = smov 0   ;;  %s2115_s14 = smov 0  }
   0x4 LB: > { %s1472_s15 = sadd.s32 4294967295, %s2083_s14   ;;  %s1473_s16 = sadd.s32 4294967294, %s2083_s14   ;;  %s2083_s14 = sphi %s2115_s14, %s15_s14   ;;  %s2079_s13 = sphi %s2113_s13, %s3190_s13   ;;  %s2075_s12 = sphi %s2111_s12, %s3189_s12   ;;  %s2071_s11 = sphi %s2109_s11, %s3188_s11   ;;  %s2067_s10 = sphi %s2107_s10, %s3187_s10   ;;  %s2063_s9 = sphi %s2105_s9, %s3186_s9  }
   0x5   : > { %s34_s17 = sadd.s32 1, %s2079_s13  ;;  %s99_s18 = sadd.s32 1, %s2071_s11 }
   0x6   : > { %p36_p0 = scmp.ge.s32.totalorder %s34_s17, 2  ;;  %p109_p1 = scmp.ne.s32.totalorder %s2071_s11, %s2067_s10 }
   0x7   : > { %p110_p2 = scmp.eq.s32.totalorder %s1472_s15, 1  ;;  %p115_p3 = scmp.ne.s32.totalorder %s2067_s10, %s2063_s9 }
   0x8   : > { %s3192_s17 = smov (%p36_p0, %s34_s17), 0  ;;  %p116_p5 = scmp.eq.s32.totalorder %s1473_s16, 1 }
   0x9   : > { %p2145_p4 = por %p110_p2, %p109_p1  ;;  %s94_s20 = ssub.s32 %s2079_s13, %s3192_s17 }
   0xa   : > { %p1476_p6 = scmp.ge.s32.totalorder %s2083_s14, 1  ;;  %p97_p7 = scmp.eq.s32.totalorder %s94_s20, 0 }
   0xb   : > { %p2152_p8 = por %p116_p5, %p115_p3  ;;  %p154_p9 = scmp.lt.s32.totalorder %s2083_s14, 3 }
   0xc   : > { %s2158_s22 = scalar_select %p97_p7, %s2071_s11, %s99_s18  }
   0xd   : > { %p155_p10 = pnand %p1476_p6, %p154_p9 }
   0xe   : > { %p185_p11 = scmp.lt.s32.totalorder (!%p155_p10), %s2075_s12, 1  ;;  %v206_v0 = vlaneseq (!%p155_p10)  ;;  %v2085_v1 = vmov (!%p155_p10), 0.0|0.0   ;;  %vm2086_vm0 = vmmov (!%p155_p10), 0   ;;  %v2087_v16 = vmov (!%p155_p10), 0.0   ;;  %s182_s3 = sand.u32 (!%p155_p10), 1, %s2067_s10  }
   0xf   : > { %158 = sbr.rel (%p155_p10) target bundleno = 469 (0x1d5), region = 28  ;;  %1796 = vmatprep.subr.bf16.mxu0 (!%p155_p10), %v2085_v1  ;;  %1820 = vmatprep.subr.bf16.mxu1 (!%p155_p10), %v2085_v1  ;;  %203 = vst [vmem:[#allocation2] sm:$0xf] (!%p155_p10), %v2087_v16  ;;  %v2088_v59 = vmov (!%p155_p10), 0   ;;  %s1477_s4 = sshll.u32 (!%p155_p10), %s182_s3, 2 }
  0x10   : > { %v207_v2 = vand.u32 (!%p155_p10), 127, %v206_v0  ;;  %v2172_v12 = vshrl.u32 (!%p155_p10), %v206_v0, 7  ;;  %1618 = vmatprep.mubr.msk.f32.mxu0 (!%p155_p10), %vm2086_vm0, %v2087_v16  ;;  %1653 = vmatprep.mubr.msk.f32.mxu1 (!%p155_p10), %vm2086_vm0, %v2087_v16  ;;  %s1481_s5 = sshll.u32 (!%p155_p10), %s2075_s12, 6  ;;  %s184_s6 = scalar_lea.vmem (!%p155_p10), [#allocation3], %s1477_s4 }
  0x11   : > { %s1383_s7 = sshll.u32 (!%p155_p10), %s184_s6, 4  ;;  %s3104_s16 = scalar_lea.hbm (!%p155_p10), %s3153_s2, %s1481_s5  ;;  %s3106_s7 = int_to_ptr.vmem [resolvable:$true] %s1383_s7 }
  0x12   : > { %v210_v3 = vcvt.s32.f32 (!%p155_p10), %v207_v2  ;;  %v2183_v20 = vadd.s32 (!%p155_p10), 8, %v2172_v12  ;;  %v2186_v21 = vsub.s32 (!%p155_p10), 0, %v2172_v12  ;;  %v2189_v22 = vadd.s32 (!%p155_p10), 16, %v2172_v12  ;;  %s1369_s18 = scalar_lea.sflag (!%p155_p10), [#allocation4], %s182_s3  ;;  %s2005_s20 = scalar_lea.vmem (!%p155_p10), %s3106_s7, 64 }
  0x13   : > { %v2192_v23 = vadd.s32 (!%p155_p10), 24, %v2172_v12  ;;  %v2195_v24 = vadd.s32 (!%p155_p10), 32, %v2172_v12  ;;  %v2198_v25 = vadd.s32 (!%p155_p10), 40, %v2172_v12  ;;  %v2201_v29 = vadd.s32 (!%p155_p10), 48, %v2172_v12  ;;  %p2006_p12 = scmp.ne.s32.totalorder (!%p155_p10), %s3106_s7, %s2005_s20 }
  0x14   : > { %v211_v4 = vadd.f32 (!%p155_p10), 0.5, %v210_v3  ;;  %v2204_v30 = vadd.s32 (!%p155_p10), 56, %v2172_v12  ;;  %v2207_v31 = vadd.s32 (!%p155_p10), 64, %v2172_v12  ;;  %v2210_v32 = vadd.s32 (!%p155_p10), 72, %v2172_v12 }
  0x15   : > { %v2214_v38 = vadd.s32 (!%p155_p10), 80, %v2172_v12  ;;  %v2217_v39 = vadd.s32 (!%p155_p10), 88, %v2172_v12  ;;  %v2220_v40 = vadd.s32 (!%p155_p10), 96, %v2172_v12  ;;  %v2223_v41 = vadd.s32 (!%p155_p10), 104, %v2172_v12  ;;  %p2007_p13 = pnand (!%p155_p10), %p2006_p12, %p2145_p4 }
  0x16   : > { %s186_s23 = scalar_select %p185_p11, %s2075_s12, 1  ;;  %v213_v5 = vmul.f32 0.125, %v211_v4  ;;  %v2226_v47 = vadd.s32 112, %v2172_v12  ;;  %v2229_v48 = vadd.s32 120, %v2172_v12 }
  0x17   : > { %p2008_p0 = pneg %p2007_p13  ;;  %s2089_s12 = smov [#allocation3]  }
  0x18   : > { %s1478_s24 = sshll.u32 %s186_s23, 2  ;;  %v214_v8 = vfloor.f32 %v213_v5  ;;  %s2009_s23 = sshll.u32 %s2089_s12, 4  ;;  %s2010_s23 = int_to_ptr.vmem [resolvable:$false] %s2009_s23 }
  0x19   : > { %s198_s27 = scalar_lea.vmem %s3152_s1, %s1478_s24  ;;  %s191_s30 = scalar_lea.vmem %s3151_s0, %s1478_s24 }
  0x1a   : > { %v719_v6 = vld [vmem:[%s198_s27] sm:$0xf]  ;;  %v215_v10 = vmul.f32 8.0, %v214_v8  ;;  %v217_v11 = vadd.f32 0.5, %v214_v8  ;;  %s2011_s24 = scalar_lea.vmem %s2010_s23, 128  ;;  %p2012_p1 = scmp.lt.s32.totalorder %s3106_s7, %s2010_s23 }
  0x1b   : > { %v204_v7 = vld [vmem:[%s191_s30] sm:$0x7]  ;;  %v2170_v9 = vand.u32 4294901760, %v719_v6  ;;  %p2013_p2 = scmp.lt.s32.totalorder %s2011_s24, %s2005_s20 }
  0x1c   : > { %v222_v13 = vmul.f32 4.0, %v204_v7  ;;  %v216_v14 = vsub.f32 %v210_v3, %v215_v10  ;;  %v218_v15 = vmul.f32 0.125, %v217_v11 }
  0x1d   : > { %v2178_v17 = vsub.f32 %v719_v6, %v2170_v9  ;;  %p2014_p3 = por %p2013_p2, %p2012_p1 }
  0x1e   : > { %v219_v18 = vfloor.f32 %v218_v15  ;;  %v223_v19 = vadd.f32 %v222_v13, %v216_v14 }
  0x1f   : > { %v3154_v33 = vand.u32 4294901760, %v2178_v17  ;;  %p2015_p5 = pnand %p2014_p3, %p2008_p0 }
  0x20   : > { %v220_v26 = vmul.f32 8.0, %v219_v18  ;;  %v225_v27 = vadd.f32 %v219_v18, %v204_v7  ;;  %v226_v28 = vfloor.f32 %v223_v19 }
  0x21   : > { %v2234_v49 = vsub.f32 %v2178_v17, %v3154_v33 }
  0x22   : > { %v221_v34 = vsub.f32 %v214_v8, %v220_v26  ;;  %v228_v35 = vfloor.f32 %v225_v27  ;;  %v1940_v36 = vtrunc.f32 %v226_v28  ;;  %v232_v37 = vsub.f32 %v223_v19, %v226_v28 }
  0x24   : > { %v224_v42 = vadd.f32 %v222_v13, %v221_v34  ;;  %v1941_v43 = vcvt.f32.s32 %v1940_v36  ;;  %v1944_v44 = vtrunc.f32 %v228_v35  ;;  %v234_v45 = vsub.f32 %v225_v27, %v228_v35 }
  0x25   : > { %v270_v46 = vsub.f32 1.0, %v232_v37 }
  0x26   : > { %v227_v50 = vfloor.f32 %v224_v42  ;;  %v2236_v51 = vcvt.f32.s32 %v1944_v44  ;;  %v276_v52 = vsub.f32 1.0, %v234_v45  ;;  %vm281_vm1 = vcmp.ge.s32.totalorder %v1941_v43, 0 }
  0x27   : > { %vm282_vm2 = vcmp.lt.s32.totalorder %v1941_v43, 8  ;;  %v2238_v53 = vrot.slane %v1941_v43, 6  ;;  %v352_v54 = vadd.s32 1, %v1941_v43  ;;  %v2240_v55 = vrot.slane %v234_v45, 2 }
  0x28   : > { %v1942_v56 = vtrunc.f32 %v227_v50  ;;  %v233_v57 = vsub.f32 %v224_v42, %v227_v50  ;;  %v278_v58 = vrot.slane %v276_v52, 2  ;;  %vm294_vm3 = vcmp.ge.s32.totalorder %v2236_v51, 0  ;;  %vm2261_vm11 = vmand %vm281_vm1, %vm282_vm2 }
  0x29   : > { %v295_v60 = vsel %vm294_vm3, 1, %v2088_v59  ;;  %vm299_vm4 = vcmp.lt.s32.totalorder %v2236_v51, 2  ;;  %v304_v61 = vmul.u32 64, %v2236_v51  ;;  %vm355_vm5 = vcmp.ge.s32.totalorder %v352_v54, 0 }
  0x2a   : > { %v1943_v62 = vcvt.f32.s32 %v1942_v56  ;;  %v271_v63 = vsub.f32 1.0, %v233_v57  ;;  %v296_v0 = vrot.slane %v295_v60, 2  ;;  %v300_v2 = vsel %vm299_vm4, 1, %v2088_v59 }
  0x2b   : > { %v301_v3 = vrot.slane %v300_v2, 2  ;;  %vm356_vm6 = vcmp.lt.s32.totalorder %v352_v54, 8  ;;  %v2247_v4 = vrot.slane %v352_v54, 6  ;;  %v408_v5 = vrot.slane %v233_v57, 1 }
  0x2c   : > { %v273_v6 = vrot.slane %v271_v63, 1  ;;  %vm284_vm7 = vcmp.ge.s32.totalorder %v1943_v62, 0  ;;  %vm289_vm8 = vcmp.lt.s32.totalorder %v1943_v62, 8  ;;  %vm2249_vm9 = vcmp.ne.s32.totalorder %v296_v0, 0  ;;  %vm2282_vm14 = vmand %vm355_vm5, %vm356_vm6 }
  0x2d   : > { %v285_v8 = vsel %vm284_vm7, 1, %v2088_v59  ;;  %v290_v10 = vsel %vm289_vm8, 1, %v2088_v59  ;;  %vm2255_vm10 = vcmp.ne.s32.totalorder %v301_v3, 0  ;;  %v305_v13 = vmul.u32 8, %v1943_v62 }
  0x2e   : > { %v275_v14 = vmul.f32 %v273_v6, %v270_v46  ;;  %v286_v18 = vrot.slane %v285_v8, 1  ;;  %v291_v19 = vrot.slane %v290_v10, 1  ;;  %v2265_v26 = vmul.f32 %v273_v6, %v232_v37 }
  0x2f   : > { %v306_v27 = vrot.slane %v305_v13, 7  ;;  %v406_v28 = vadd.s32 1, %v1943_v62  ;;  %v2267_v34 = vmul.f32 %v408_v5, %v270_v46  ;;  %v2269_v35 = vmul.f32 %v408_v5, %v232_v37 }
  0x30   : > { %v280_v36 = vmul.f32 %v278_v58, %v275_v14  ;;  %vm2271_vm12 = vcmp.ne.s32.totalorder %v286_v18, 0  ;;  %vm2275_vm13 = vcmp.ne.s32.totalorder %v291_v19, 0  ;;  %v354_v44 = vmul.f32 %v2265_v26, %v278_v58 }
  0x31   : > { %vm288_vm15 = vmand %vm2261_vm11, %vm2271_vm12  ;;  %v307_v37 = vadd.s32 %v306_v27, %v304_v61  ;;  %v411_v46 = vmul.f32 %v2267_v34, %v278_v58  ;;  %vm412_vm1 = vcmp.ge.s32.totalorder %v406_v28, 0  ;;  %vm417_vm2 = vcmp.lt.s32.totalorder %v406_v28, 8 }
  0x32   : > { %vm2295_vm3 = vmand %vm288_vm15, %vm2275_vm13  ;;  %v2300_v52 = vrot.slane %v280_v36, %v2186_v21  ;;  %v2303_v54 = vrot.slane %v354_v44, %v2186_v21  ;;  %v413_v56 = vsel %vm412_vm1, 1, %v2088_v59  ;;  %v418_v57 = vsel %vm417_vm2, 1, %v2088_v59 }
  0x33   : > { %vm298_vm4 = vmand %vm2295_vm3, %vm2249_vm9  ;;  %v309_v60 = vadd.s32 %v2238_v53, %v307_v37  ;;  %v363_v62 = vadd.s32 %v2247_v4, %v307_v37  ;;  %v414_v63 = vrot.slane %v413_v56, 1  ;;  %v419_v0 = vrot.slane %v418_v57, 1 }
  0x34   : > { %vm303_vm5 = vmand %vm298_vm4, %vm2255_vm10  ;;  %v424_v2 = vmul.u32 8, %v406_v28  ;;  %v2316_v3 = vrot.slane %v411_v46, %v2186_v21  ;;  %v471_v5 = vmul.f32 %v2269_v35, %v278_v58  ;;  %v519_v6 = vadd.s32 1, %v2236_v51 }
  0x35   : > { %v310_v8 = vrot.slane %v309_v60, 2  ;;  %vm358_vm6 = vmand %vm2282_vm14, %vm2271_vm12  ;;  %v364_v10 = vrot.slane %v363_v62, 2  ;;  %vm2324_vm7 = vcmp.ne.s32.totalorder %v414_v63, 0  ;;  %vm2328_vm8 = vcmp.ne.s32.totalorder %v419_v0, 0 }
  0x36   : > { %vm2334_vm15 = vmand %vm358_vm6, %vm2275_vm13  ;;  %v425_v19 = vrot.slane %v424_v2, 7  ;;  %v2339_v28 = vrot.slane %v471_v5, %v2186_v21  ;;  %v523_v36 = vmul.f32 %v2240_v55, %v275_v14  ;;  %vm524_vm12 = vcmp.ge.s32.totalorder %v519_v6, 0 }
  0x37   : > { %v311_v42 = vsel %vm303_vm5, %v310_v8, 4294967295  ;;  %vm360_vm1 = vmand %vm2334_vm15, %vm2249_vm9  ;;  %v525_v44 = vsel %vm524_vm12, 1, %v2088_v59  ;;  %vm529_vm2 = vcmp.lt.s32.totalorder %v519_v6, 2  ;;  %v534_v43 = vmul.u32 64, %v519_v6 }
  0x38   : > { %v2348_v37 = vrot.slane %v311_v42, %v2186_v21  ;;  %vm361_vm13 = vmand %vm360_vm1, %vm2255_vm10  ;;  %v426_v14 = vadd.s32 %v425_v19, %v304_v61  ;;  %v526_v46 = vrot.slane %v525_v44, 2  ;;  %v530_v56 = vsel %vm529_vm2, 1, %v2088_v59 }
  0x39   : > { %v365_v57 = vsel %vm361_vm13, %v364_v10, 4294967295  ;;  %vm416_vm4 = vmand %vm2261_vm11, %vm2324_vm7  ;;  %v531_v60 = vrot.slane %v530_v56, 2  ;;  %v535_v62 = vadd.s32 %v534_v43, %v306_v27  ;;  %v2360_v63 = vrot.slane %v523_v36, %v2186_v21 }
  0x3a   : > { %vm316_vm5 = vcmp.eq.s32.totalorder %v2172_v12, %v2348_v37  ;;  %vm317_vm6 = vcmp.eq.s32.totalorder %v2183_v20, %v2348_v37  ;;  %v2367_v51 = vrot.slane %v365_v57, %v2186_v21  ;;  %vm2371_vm12 = vmand %vm416_vm4, %vm2328_vm8  ;;  %v427_v61 = vadd.s32 %v426_v14, %v2238_v53 }
  0x3b   : > { %v336_v15 = vsel %vm316_vm5, %v2300_v52, 0.0  ;;  %v337_v27 = vsel %vm317_vm6, %v2300_v52, 0.0  ;;  %vm422_vm11 = vmand %vm2371_vm12, %vm2249_vm9  ;;  %v476_v0 = vadd.s32 %v426_v14, %v2247_v4  ;;  %vm2383_vm1 = vcmp.ne.s32.totalorder %v526_v46, 0 }
  0x3c   : > { %vm370_vm2 = vcmp.eq.s32.totalorder %v2172_v12, %v2367_v51  ;;  %vm371_vm13 = vcmp.eq.s32.totalorder %v2183_v20, %v2367_v51  ;;  %vm423_vm4 = vmand %vm422_vm11, %vm2255_vm10  ;;  %v428_v5 = vrot.slane %v427_v61, 2  ;;  %vm2393_vm5 = vcmp.ne.s32.totalorder %v531_v60, 0 }
  0x3d   : > { %v390_v8 = vsel %vm370_vm2, %v2303_v54, %v336_v15  ;;  %v391_v10 = vsel %vm371_vm13, %v2303_v54, %v337_v27  ;;  %vm472_vm6 = vmand %vm2282_vm14, %vm2324_vm7  ;;  %v477_v36 = vrot.slane %v476_v0, 2  ;;  %v536_v42 = vadd.s32 %v535_v62, %v2238_v53 }
  0x3e   : > { %v429_v44 = vsel %vm423_vm4, %v428_v5, 4294967295  ;;  %vm2406_vm11 = vmand %vm472_vm6, %vm2328_vm8  ;;  %v579_v46 = vmul.f32 %v2240_v55, %v2265_v26  ;;  %v582_v56 = vadd.s32 %v535_v62, %v2247_v4  ;;  %v625_v13 = vmul.f32 %v2240_v55, %v2267_v34 }
  0x3f   : > { %v2416_v45 = vrot.slane %v429_v44, %v2186_v21  ;;  %vm474_vm14 = vmand %vm2406_vm11, %vm2249_vm9  ;;  %v537_v18 = vrot.slane %v536_v42, 2  ;;  %v628_v57 = vadd.s32 %v534_v43, %v425_v19  ;;  %v672_v60 = vmul.f32 %v2240_v55, %v2269_v35 }
  0x40   : > { %vm475_vm7 = vmand %vm474_vm14, %vm2255_vm10  ;;  %v583_v26 = vrot.slane %v582_v56, 2  ;;  %v2427_v62 = vrot.slane %v579_v46, %v2186_v21  ;;  %v2430_v34 = vrot.slane %v625_v13, %v2186_v21  ;;  %vm318_vm8 = vcmp.eq.s32.totalorder %v2189_v22, %v2348_v37 }
  0x41   : > { %vm434_vm9 = vcmp.eq.s32.totalorder %v2172_v12, %v2416_v45  ;;  %vm435_vm2 = vcmp.eq.s32.totalorder %v2183_v20, %v2416_v45  ;;  %v478_v55 = vsel %vm475_vm7, %v477_v36, 4294967295  ;;  %vm528_vm10 = vmand %vm2295_vm3, %vm2383_vm1  ;;  %v629_v7 = vadd.s32 %v628_v57, %v2238_v53 }
  0x42   : > { %v454_v11 = vsel %vm434_vm9, %v2316_v3, %v390_v8  ;;  %v455_v35 = vsel %vm435_vm2, %v2316_v3, %v391_v10  ;;  %v2446_v19 = vrot.slane %v478_v55, %v2186_v21  ;;  %vm533_vm13 = vmand %vm528_vm10, %vm2393_vm5  ;;  %v675_v43 = vadd.s32 %v628_v57, %v2247_v4 }
  0x43   : > { %v538_v61 = vsel %vm533_vm13, %v537_v18, 4294967295  ;;  %vm580_vm3 = vmand %vm2334_vm15, %vm2383_vm1  ;;  %v630_v50 = vrot.slane %v629_v7, 2  ;;  %v2456_v53 = vrot.slane %v672_v60, %v2186_v21  ;;  %vm319_vm4 = vcmp.eq.s32.totalorder %v2192_v23, %v2348_v37 }
  0x44   : > { %vm483_vm6 = vcmp.eq.s32.totalorder %v2172_v12, %v2446_v19  ;;  %vm484_vm14 = vcmp.eq.s32.totalorder %v2183_v20, %v2446_v19  ;;  %v2465_v4 = vrot.slane %v538_v61, %v2186_v21  ;;  %vm581_vm7 = vmand %vm580_vm3, %vm2393_vm5  ;;  %v676_v58 = vrot.slane %v675_v43, 2 }
  0x45   : > { %v503_v15 = vsel %vm483_vm6, %v2339_v28, %v454_v11  ;;  %v504_v27 = vsel %vm484_vm14, %v2339_v28, %v455_v35  ;;  %v584_v0 = vsel %vm581_vm7, %v583_v26, 4294967295  ;;  %vm626_vm15 = vmand %vm2371_vm12, %vm2383_vm1  ;;  %v338_v5 = vsel %vm318_vm8, %v2300_v52, 0.0 }
  0x46   : > { %vm543_vm9 = vcmp.eq.s32.totalorder %v2172_v12, %v2465_v4  ;;  %vm544_vm2 = vcmp.eq.s32.totalorder %v2183_v20, %v2465_v4  ;;  %v2484_v8 = vrot.slane %v584_v0, %v2186_v21  ;;  %vm627_vm10 = vmand %vm626_vm15, %vm2393_vm5  ;;  %v339_v59 = vsel %vm319_vm4, %v2300_v52, 0.0 }
  0x47   : > { %v563_v10 = vsel %vm543_vm9, %v2360_v63, %v503_v15  ;;  %v564_v36 = vsel %vm544_vm2, %v2360_v63, %v504_v27  ;;  %v631_v42 = vsel %vm627_vm10, %v630_v50, 4294967295  ;;  %vm673_vm12 = vmand %vm2406_vm11, %vm2383_vm1  ;;  %vm372_vm8 = vcmp.eq.s32.totalorder %v2189_v22, %v2367_v51 }
  0x48   : > { %vm589_vm13 = vcmp.eq.s32.totalorder %v2172_v12, %v2484_v8  ;;  %vm590_vm3 = vcmp.eq.s32.totalorder %v2183_v20, %v2484_v8  ;;  %v2505_v44 = vrot.slane %v631_v42, %v2186_v21  ;;  %vm674_vm4 = vmand %vm673_vm12, %vm2393_vm5  ;;  %vm373_vm6 = vcmp.eq.s32.totalorder %v2192_v23, %v2367_v51 }
  0x49   : > { %v609_v2 = vsel %vm589_vm13, %v2427_v62, %v563_v10  ;;  %v610_v14 = vsel %vm590_vm3, %v2427_v62, %v564_v36  ;;  %v677_v46 = vsel %vm674_vm4, %v676_v58, 4294967295  ;;  %v392_v56 = vsel %vm372_vm8, %v2303_v54, %v338_v5 }
  0x4a   : > { %vm636_vm1 = vcmp.eq.s32.totalorder %v2172_v12, %v2505_v44  ;;  %vm637_vm11 = vcmp.eq.s32.totalorder %v2183_v20, %v2505_v44  ;;  %v2519_v13 = vrot.slane %v677_v46, %v2186_v21  ;;  %v393_v6 = vsel %vm373_vm6, %v2303_v54, %v339_v59 }
  0x4b   : > { %v656_v18 = vsel %vm636_vm1, %v2430_v34, %v609_v2  ;;  %v657_v57 = vsel %vm637_vm11, %v2430_v34, %v610_v14  ;;  %vm436_vm5 = vcmp.eq.s32.totalorder %v2189_v22, %v2416_v45  ;;  %vm437_vm14 = vcmp.eq.s32.totalorder %v2192_v23, %v2416_v45 }
  0x4c   : > { %vm682_vm7 = vcmp.eq.s32.totalorder %v2172_v12, %v2519_v13  ;;  %vm683_vm15 = vcmp.eq.s32.totalorder %v2183_v20, %v2519_v13  ;;  %v456_v21 = vsel %vm436_vm5, %v2316_v3, %v392_v56  ;;  %v457_v60 = vsel %vm437_vm14, %v2316_v3, %v393_v6 }
  0x4d   : > { %v702_v26 = vsel %vm682_vm7, %v2456_v53, %v656_v18  ;;  %v703_v55 = vsel %vm683_vm15, %v2456_v53, %v657_v57  ;;  %vm485_vm9 = vcmp.eq.s32.totalorder %v2189_v22, %v2446_v19  ;;  %vm486_vm2 = vcmp.eq.s32.totalorder %v2192_v23, %v2446_v19 }
  0x4e   : > { %v721_v7 = vand.u32 4294901760, %v702_v26  ;;  %v724_v11 = vand.u32 4294901760, %v703_v55  ;;  %v505_v12 = vsel %vm485_vm9, %v2339_v28, %v456_v21  ;;  %v506_v20 = vsel %vm486_vm2, %v2339_v28, %v457_v60 }
  0x4f   : > { %vm545_vm10 = vcmp.eq.s32.totalorder %v2189_v22, %v2465_v4  ;;  %vm546_vm12 = vcmp.eq.s32.totalorder %v2192_v23, %v2465_v4  ;;  %vm591_vm8 = vcmp.eq.s32.totalorder %v2189_v22, %v2484_v8  ;;  %vm592_vm13 = vcmp.eq.s32.totalorder %v2192_v23, %v2484_v8 }
  0x50   : > { %v2550_v35 = vpack.c.bf16 %v724_v11, %v721_v7  ;;  %v2552_v43 = vsub.f32 %v702_v26, %v721_v7  ;;  %v2554_v61 = vsub.f32 %v703_v55, %v724_v11  ;;  %v565_v50 = vsel %vm545_vm10, %v2360_v63, %v505_v12 }
  0x51   : > { %v566_v58 = vsel %vm546_vm12, %v2360_v63, %v506_v20  ;;  %v611_v15 = vsel %vm591_vm8, %v2427_v62, %v565_v50  ;;  %vm638_vm3 = vcmp.eq.s32.totalorder %v2189_v22, %v2505_v44  ;;  %vm639_vm4 = vcmp.eq.s32.totalorder %v2192_v23, %v2505_v44 }
  0x52   : > { %1798 = vmatpush3.bf16.msra.mxu0 %v2550_v35  ;;  %v612_v27 = vsel %vm592_vm13, %v2427_v62, %v566_v58  ;;  %v658_v0 = vsel %vm638_vm3, %v2430_v34, %v611_v15  ;;  %vm684_vm6 = vcmp.eq.s32.totalorder %v2189_v22, %v2519_v13  ;;  %vm685_vm1 = vcmp.eq.s32.totalorder %v2192_v23, %v2519_v13 }
  0x53   : > { %1799 = vmatprep.subr.bf16.mxu0 %v2085_v1  ;;  %v659_v5 = vsel %vm639_vm4, %v2430_v34, %v612_v27  ;;  %v704_v59 = vsel %vm684_vm6, %v2456_v53, %v658_v0  ;;  %vm320_vm11 = vcmp.eq.s32.totalorder %v2195_v24, %v2348_v37  ;;  %vm321_vm5 = vcmp.eq.s32.totalorder %v2198_v25, %v2348_v37 }
  0x54   : > { %v705_v10 = vsel %vm685_vm1, %v2456_v53, %v659_v5  ;;  %v727_v36 = vand.u32 4294901760, %v704_v59  ;;  %v340_v22 = vsel %vm320_vm11, %v2300_v52, 0.0  ;;  %v341_v42 = vsel %vm321_vm5, %v2300_v52, 0.0 }
  0x55   : > { %v730_v23 = vand.u32 4294901760, %v705_v10  ;;  %vm374_vm14 = vcmp.eq.s32.totalorder %v2195_v24, %v2367_v51  ;;  %vm375_vm7 = vcmp.eq.s32.totalorder %v2198_v25, %v2367_v51  ;;  %vm438_vm15 = vcmp.eq.s32.totalorder %v2195_v24, %v2416_v45 }
  0x56   : > { %v2586_v2 = vsub.f32 %v704_v59, %v727_v36  ;;  %v394_v14 = vsel %vm374_vm14, %v2303_v54, %v340_v22  ;;  %v395_v46 = vsel %vm375_vm7, %v2303_v54, %v341_v42  ;;  %vm439_vm9 = vcmp.eq.s32.totalorder %v2198_v25, %v2416_v45 }
  0x57   : > { %v2592_v56 = vpack.c.bf16 %v730_v23, %v727_v36  ;;  %v2594_v6 = vsub.f32 %v705_v10, %v730_v23  ;;  %v458_v18 = vsel %vm438_vm15, %v2316_v3, %v394_v14  ;;  %v459_v57 = vsel %vm439_vm9, %v2316_v3, %v395_v46 }
  0x58   : > { %vm487_vm2 = vcmp.eq.s32.totalorder %v2195_v24, %v2446_v19  ;;  %vm488_vm10 = vcmp.eq.s32.totalorder %v2198_v25, %v2446_v19  ;;  %vm547_vm12 = vcmp.eq.s32.totalorder %v2195_v24, %v2465_v4  ;;  %vm548_vm8 = vcmp.eq.s32.totalorder %v2198_v25, %v2465_v4 }
  0x59   : > { %1801 = vmatpush3.bf16.msra.mxu0 %v2592_v56  ;;  %v507_v21 = vsel %vm487_vm2, %v2339_v28, %v458_v18  ;;  %v508_v60 = vsel %vm488_vm10, %v2339_v28, %v459_v57  ;;  %vm593_vm13 = vcmp.eq.s32.totalorder %v2195_v24, %v2484_v8  ;;  %vm594_vm3 = vcmp.eq.s32.totalorder %v2198_v25, %v2484_v8 }
  0x5a   : > { %1802 = vmatprep.subr.bf16.mxu0 %v2085_v1  ;;  %v567_v26 = vsel %vm547_vm12, %v2360_v63, %v507_v21  ;;  %v568_v55 = vsel %vm548_vm8, %v2360_v63, %v508_v60  ;;  %vm640_vm4 = vcmp.eq.s32.totalorder %v2195_v24, %v2505_v44  ;;  %vm641_vm6 = vcmp.eq.s32.totalorder %v2198_v25, %v2505_v44 }
  0x5b   : > { %v613_v7 = vsel %vm593_vm13, %v2427_v62, %v567_v26  ;;  %v614_v11 = vsel %vm594_vm3, %v2427_v62, %v568_v55  ;;  %vm686_vm1 = vcmp.eq.s32.totalorder %v2195_v24, %v2519_v13  ;;  %vm687_vm11 = vcmp.eq.s32.totalorder %v2198_v25, %v2519_v13 }
  0x5c   : > { %v660_v12 = vsel %vm640_vm4, %v2430_v34, %v613_v7  ;;  %v661_v20 = vsel %vm641_vm6, %v2430_v34, %v614_v11  ;;  %v814_v50 = vand.u32 4294901760, %v2552_v43  ;;  %v821_v58 = vand.u32 4294901760, %v2554_v61 }
  0x5d   : > { %v706_v15 = vsel %vm686_vm1, %v2456_v53, %v660_v12  ;;  %v707_v27 = vsel %vm687_vm11, %v2456_v53, %v661_v20  ;;  %vm322_vm5 = vcmp.eq.s32.totalorder %v2201_v29, %v2348_v37  ;;  %vm323_vm14 = vcmp.eq.s32.totalorder %v2204_v30, %v2348_v37 }
  0x5e   : > { %v733_v24 = vand.u32 4294901760, %v706_v15  ;;  %v736_v25 = vand.u32 4294901760, %v707_v27  ;;  %v815_v0 = vsub.f32 %v2552_v43, %v814_v50  ;;  %v822_v5 = vsub.f32 %v2554_v61, %v821_v58 }
  0x5f   : > { %v342_v59 = vsel %vm322_vm5, %v2300_v52, 0.0  ;;  %v343_v10 = vsel %vm323_vm14, %v2300_v52, 0.0  ;;  %vm376_vm7 = vcmp.eq.s32.totalorder %v2201_v29, %v2367_v51  ;;  %vm377_vm15 = vcmp.eq.s32.totalorder %v2204_v30, %v2367_v51 }
  0x60   : > { %v2648_v36 = vpack.c.bf16 %v736_v25, %v733_v24  ;;  %v2650_v22 = vsub.f32 %v706_v15, %v733_v24  ;;  %v2652_v42 = vsub.f32 %v707_v27, %v736_v25  ;;  %v816_v23 = vand.u32 4294901760, %v815_v0 }
  0x61   : > { %v823_v14 = vand.u32 4294901760, %v822_v5  ;;  %v396_v46 = vsel %vm376_vm7, %v2303_v54, %v342_v59  ;;  %v397_v18 = vsel %vm377_vm15, %v2303_v54, %v343_v10  ;;  %vm440_vm9 = vcmp.eq.s32.totalorder %v2201_v29, %v2416_v45 }
  0x62   : > { %1804 = vmatpush3.bf16.msra.mxu0 %v2648_v36  ;;  %vm441_vm2 = vcmp.eq.s32.totalorder %v2204_v30, %v2416_v45  ;;  %v460_v57 = vsel %vm440_vm9, %v2316_v3, %v396_v46  ;;  %vm489_vm10 = vcmp.eq.s32.totalorder %v2201_v29, %v2446_v19  ;;  %vm490_vm12 = vcmp.eq.s32.totalorder %v2204_v30, %v2446_v19 }
  0x63   : > { %v1821_v21 = vpack.c.bf16 %v823_v14, %v816_v23  ;;  %1805 = vmatprep.subr.bf16.mxu0 %v2085_v1  ;;  %v461_v60 = vsel %vm441_vm2, %v2316_v3, %v397_v18  ;;  %v509_v26 = vsel %vm489_vm10, %v2339_v28, %v460_v57  ;;  %vm549_vm8 = vcmp.eq.s32.totalorder %v2201_v29, %v2465_v4 }
  0x64   : > { %v510_v55 = vsel %vm490_vm12, %v2339_v28, %v461_v60  ;;  %vm550_vm13 = vcmp.eq.s32.totalorder %v2204_v30, %v2465_v4  ;;  %v569_v7 = vsel %vm549_vm8, %v2360_v63, %v509_v26  ;;  %vm595_vm3 = vcmp.eq.s32.totalorder %v2201_v29, %v2484_v8 }
  0x65   : > { %1822 = vmatpush3.bf16.msra.mxu1 %v1821_v21  ;;  %v570_v11 = vsel %vm550_vm13, %v2360_v63, %v510_v55  ;;  %vm596_vm4 = vcmp.eq.s32.totalorder %v2204_v30, %v2484_v8  ;;  %v615_v12 = vsel %vm595_vm3, %v2427_v62, %v569_v7  ;;  %vm642_vm6 = vcmp.eq.s32.totalorder %v2201_v29, %v2505_v44 }
  0x66   : > { %1823 = vmatprep.subr.bf16.mxu1 %v2085_v1  ;;  %v616_v20 = vsel %vm596_vm4, %v2427_v62, %v570_v11  ;;  %vm643_vm1 = vcmp.eq.s32.totalorder %v2204_v30, %v2505_v44  ;;  %v662_v15 = vsel %vm642_vm6, %v2430_v34, %v615_v12  ;;  %vm688_vm11 = vcmp.eq.s32.totalorder %v2201_v29, %v2519_v13 }
  0x67   : > { %v663_v27 = vsel %vm643_vm1, %v2430_v34, %v616_v20  ;;  %vm689_vm5 = vcmp.eq.s32.totalorder %v2204_v30, %v2519_v13  ;;  %v708_v24 = vsel %vm688_vm11, %v2456_v53, %v662_v15  ;;  %v828_v25 = vand.u32 4294901760, %v2586_v2 }
  0x68   : > { %v709_v0 = vsel %vm689_vm5, %v2456_v53, %v663_v27  ;;  %v739_v5 = vand.u32 4294901760, %v708_v24  ;;  %v835_v59 = vand.u32 4294901760, %v2594_v6  ;;  %vm324_vm14 = vcmp.eq.s32.totalorder %v2207_v31, %v2348_v37 }
  0x69   : > { %v742_v10 = vand.u32 4294901760, %v709_v0  ;;  %v829_v29 = vsub.f32 %v2586_v2, %v828_v25  ;;  %vm325_vm7 = vcmp.eq.s32.totalorder %v2210_v32, %v2348_v37  ;;  %v344_v30 = vsel %vm324_vm14, %v2300_v52, 0.0 }
  0x6a   : > { %v2705_v23 = vsub.f32 %v708_v24, %v739_v5  ;;  %v836_v14 = vsub.f32 %v2594_v6, %v835_v59  ;;  %v345_v46 = vsel %vm325_vm7, %v2300_v52, 0.0  ;;  %vm378_vm15 = vcmp.eq.s32.totalorder %v2207_v31, %v2367_v51 }
  0x6b   : > { %v2713_v18 = vpack.c.bf16 %v742_v10, %v739_v5  ;;  %v2715_v57 = vsub.f32 %v709_v0, %v742_v10  ;;  %v830_v21 = vand.u32 4294901760, %v829_v29  ;;  %vm379_vm9 = vcmp.eq.s32.totalorder %v2210_v32, %v2367_v51 }
  0x6c   : > { %v837_v60 = vand.u32 4294901760, %v836_v14  ;;  %v398_v26 = vsel %vm378_vm15, %v2303_v54, %v344_v30  ;;  %v399_v55 = vsel %vm379_vm9, %v2303_v54, %v345_v46  ;;  %vm442_vm2 = vcmp.eq.s32.totalorder %v2207_v31, %v2416_v45 }
  0x6d   : > { %1807 = vmatpush3.bf16.msra.mxu0 %v2713_v18  ;;  %vm443_vm10 = vcmp.eq.s32.totalorder %v2210_v32, %v2416_v45  ;;  %v462_v7 = vsel %vm442_vm2, %v2316_v3, %v398_v26  ;;  %vm491_vm12 = vcmp.eq.s32.totalorder %v2207_v31, %v2446_v19  ;;  %vm492_vm8 = vcmp.eq.s32.totalorder %v2210_v32, %v2446_v19 }
  0x6e   : > { %v1824_v11 = vpack.c.bf16 %v837_v60, %v830_v21  ;;  %1808 = vmatprep.subr.bf16.mxu0 %v2085_v1  ;;  %v463_v12 = vsel %vm443_vm10, %v2316_v3, %v399_v55  ;;  %v511_v20 = vsel %vm491_vm12, %v2339_v28, %v462_v7  ;;  %vm551_vm13 = vcmp.eq.s32.totalorder %v2207_v31, %v2465_v4 }
  0x6f   : > { %v512_v15 = vsel %vm492_vm8, %v2339_v28, %v463_v12  ;;  %vm552_vm3 = vcmp.eq.s32.totalorder %v2210_v32, %v2465_v4  ;;  %v571_v27 = vsel %vm551_vm13, %v2360_v63, %v511_v20  ;;  %vm597_vm4 = vcmp.eq.s32.totalorder %v2207_v31, %v2484_v8 }
  0x70   : > { %1825 = vmatpush3.bf16.msra.mxu1 %v1824_v11  ;;  %v572_v24 = vsel %vm552_vm3, %v2360_v63, %v512_v15  ;;  %vm598_vm6 = vcmp.eq.s32.totalorder %v2210_v32, %v2484_v8  ;;  %v617_v0 = vsel %vm597_vm4, %v2427_v62, %v571_v27  ;;  %vm644_vm1 = vcmp.eq.s32.totalorder %v2207_v31, %v2505_v44 }
  0x71   : > { %1826 = vmatprep.subr.bf16.mxu1 %v2085_v1  ;;  %v618_v5 = vsel %vm598_vm6, %v2427_v62, %v572_v24  ;;  %vm645_vm11 = vcmp.eq.s32.totalorder %v2210_v32, %v2505_v44  ;;  %v664_v10 = vsel %vm644_vm1, %v2430_v34, %v617_v0  ;;  %vm690_vm5 = vcmp.eq.s32.totalorder %v2207_v31, %v2519_v13 }
  0x72   : > { %v665_v29 = vsel %vm645_vm11, %v2430_v34, %v618_v5  ;;  %vm691_vm14 = vcmp.eq.s32.totalorder %v2210_v32, %v2519_v13  ;;  %v710_v30 = vsel %vm690_vm5, %v2456_v53, %v664_v10  ;;  %v842_v14 = vand.u32 4294901760, %v2650_v22 }
  0x73   : > { %v711_v46 = vsel %vm691_vm14, %v2456_v53, %v665_v29  ;;  %v745_v21 = vand.u32 4294901760, %v710_v30  ;;  %v849_v60 = vand.u32 4294901760, %v2652_v42  ;;  %vm326_vm7 = vcmp.eq.s32.totalorder %v2214_v38, %v2348_v37 }
  0x74   : > { %v748_v26 = vand.u32 4294901760, %v711_v46  ;;  %v843_v31 = vsub.f32 %v2650_v22, %v842_v14  ;;  %vm327_vm15 = vcmp.eq.s32.totalorder %v2217_v39, %v2348_v37  ;;  %v346_v32 = vsel %vm326_vm7, %v2300_v52, 0.0 }
  0x75   : > { %v2770_v55 = vsub.f32 %v710_v30, %v745_v21  ;;  %v850_v7 = vsub.f32 %v2652_v42, %v849_v60  ;;  %v347_v11 = vsel %vm327_vm15, %v2300_v52, 0.0  ;;  %vm380_vm9 = vcmp.eq.s32.totalorder %v2214_v38, %v2367_v51 }
  0x76   : > { %v2778_v12 = vpack.c.bf16 %v748_v26, %v745_v21  ;;  %v2780_v20 = vsub.f32 %v711_v46, %v748_v26  ;;  %v844_v15 = vand.u32 4294901760, %v843_v31  ;;  %vm381_vm2 = vcmp.eq.s32.totalorder %v2217_v39, %v2367_v51 }
  0x77   : > { %v851_v27 = vand.u32 4294901760, %v850_v7  ;;  %v400_v24 = vsel %vm380_vm9, %v2303_v54, %v346_v32  ;;  %v401_v0 = vsel %vm381_vm2, %v2303_v54, %v347_v11  ;;  %vm444_vm10 = vcmp.eq.s32.totalorder %v2214_v38, %v2416_v45 }
  0x78   : > { %1810 = vmatpush3.bf16.msra.mxu0 %v2778_v12  ;;  %vm445_vm12 = vcmp.eq.s32.totalorder %v2217_v39, %v2416_v45  ;;  %v464_v5 = vsel %vm444_vm10, %v2316_v3, %v400_v24  ;;  %vm493_vm8 = vcmp.eq.s32.totalorder %v2214_v38, %v2446_v19  ;;  %vm494_vm13 = vcmp.eq.s32.totalorder %v2217_v39, %v2446_v19 }
  0x79   : > { %v1827_v10 = vpack.c.bf16 %v851_v27, %v844_v15  ;;  %1811 = vmatprep.subr.bf16.mxu0 %v2085_v1  ;;  %v465_v29 = vsel %vm445_vm12, %v2316_v3, %v401_v0  ;;  %v513_v30 = vsel %vm493_vm8, %v2339_v28, %v464_v5  ;;  %vm553_vm3 = vcmp.eq.s32.totalorder %v2214_v38, %v2465_v4 }
  0x7a   : > { %v514_v46 = vsel %vm494_vm13, %v2339_v28, %v465_v29  ;;  %vm554_vm4 = vcmp.eq.s32.totalorder %v2217_v39, %v2465_v4  ;;  %v573_v21 = vsel %vm553_vm3, %v2360_v63, %v513_v30  ;;  %vm599_vm6 = vcmp.eq.s32.totalorder %v2214_v38, %v2484_v8 }
  0x7b   : > { %1828 = vmatpush3.bf16.msra.mxu1 %v1827_v10  ;;  %v574_v26 = vsel %vm554_vm4, %v2360_v63, %v514_v46  ;;  %vm600_vm1 = vcmp.eq.s32.totalorder %v2217_v39, %v2484_v8  ;;  %v619_v31 = vsel %vm599_vm6, %v2427_v62, %v573_v21  ;;  %vm646_vm11 = vcmp.eq.s32.totalorder %v2214_v38, %v2505_v44 }
  0x7c   : > { %1829 = vmatprep.subr.bf16.mxu1 %v2085_v1  ;;  %v620_v32 = vsel %vm600_vm1, %v2427_v62, %v574_v26  ;;  %vm647_vm5 = vcmp.eq.s32.totalorder %v2217_v39, %v2505_v44  ;;  %v666_v7 = vsel %vm646_vm11, %v2430_v34, %v619_v31  ;;  %vm692_vm14 = vcmp.eq.s32.totalorder %v2214_v38, %v2519_v13 }
  0x7d   : > { %v667_v11 = vsel %vm647_vm5, %v2430_v34, %v620_v32  ;;  %vm693_vm7 = vcmp.eq.s32.totalorder %v2217_v39, %v2519_v13  ;;  %v712_v15 = vsel %vm692_vm14, %v2456_v53, %v666_v7  ;;  %v856_v27 = vand.u32 4294901760, %v2705_v23 }
  0x7e   : > { %v713_v24 = vsel %vm693_vm7, %v2456_v53, %v667_v11  ;;  %v751_v0 = vand.u32 4294901760, %v712_v15  ;;  %v863_v5 = vand.u32 4294901760, %v2715_v57  ;;  %vm328_vm15 = vcmp.eq.s32.totalorder %v2220_v40, %v2348_v37 }
  0x7f   : > { %v754_v10 = vand.u32 4294901760, %v713_v24  ;;  %v857_v38 = vsub.f32 %v2705_v23, %v856_v27  ;;  %vm329_vm9 = vcmp.eq.s32.totalorder %v2223_v41, %v2348_v37  ;;  %v348_v39 = vsel %vm328_vm15, %v2300_v52, 0.0 }
  0x80   : > { %v2835_v29 = vsub.f32 %v712_v15, %v751_v0  ;;  %v864_v30 = vsub.f32 %v2715_v57, %v863_v5  ;;  %v349_v46 = vsel %vm329_vm9, %v2300_v52, 0.0  ;;  %vm382_vm2 = vcmp.eq.s32.totalorder %v2220_v40, %v2367_v51 }
  0x81   : > { %v2843_v21 = vpack.c.bf16 %v754_v10, %v751_v0  ;;  %v2845_v26 = vsub.f32 %v713_v24, %v754_v10  ;;  %v858_v31 = vand.u32 4294901760, %v857_v38  ;;  %vm383_vm10 = vcmp.eq.s32.totalorder %v2223_v41, %v2367_v51 }
  0x82   : > { %v865_v32 = vand.u32 4294901760, %v864_v30  ;;  %v402_v7 = vsel %vm382_vm2, %v2303_v54, %v348_v39  ;;  %v403_v11 = vsel %vm383_vm10, %v2303_v54, %v349_v46  ;;  %vm446_vm12 = vcmp.eq.s32.totalorder %v2220_v40, %v2416_v45 }
  0x83   : > { %1813 = vmatpush3.bf16.msra.mxu0 %v2843_v21  ;;  %vm447_vm8 = vcmp.eq.s32.totalorder %v2223_v41, %v2416_v45  ;;  %v466_v15 = vsel %vm446_vm12, %v2316_v3, %v402_v7  ;;  %vm495_vm13 = vcmp.eq.s32.totalorder %v2220_v40, %v2446_v19  ;;  %vm496_vm3 = vcmp.eq.s32.totalorder %v2223_v41, %v2446_v19 }
  0x84   : > { %v1830_v24 = vpack.c.bf16 %v865_v32, %v858_v31  ;;  %1814 = vmatprep.subr.bf16.mxu0 %v2085_v1  ;;  %v467_v0 = vsel %vm447_vm8, %v2316_v3, %v403_v11  ;;  %v515_v10 = vsel %vm495_vm13, %v2339_v28, %v466_v15  ;;  %vm555_vm4 = vcmp.eq.s32.totalorder %v2220_v40, %v2465_v4 }
  0x85   : > { %v516_v38 = vsel %vm496_vm3, %v2339_v28, %v467_v0  ;;  %vm556_vm6 = vcmp.eq.s32.totalorder %v2223_v41, %v2465_v4  ;;  %v575_v39 = vsel %vm555_vm4, %v2360_v63, %v515_v10  ;;  %vm601_vm1 = vcmp.eq.s32.totalorder %v2220_v40, %v2484_v8 }
  0x86   : > { %1831 = vmatpush3.bf16.msra.mxu1 %v1830_v24  ;;  %v576_v30 = vsel %vm556_vm6, %v2360_v63, %v516_v38  ;;  %vm602_vm11 = vcmp.eq.s32.totalorder %v2223_v41, %v2484_v8  ;;  %v621_v46 = vsel %vm601_vm1, %v2427_v62, %v575_v39  ;;  %vm648_vm5 = vcmp.eq.s32.totalorder %v2220_v40, %v2505_v44 }
  0x87   : > { %1832 = vmatprep.subr.bf16.mxu1 %v2085_v1  ;;  %v622_v31 = vsel %vm602_vm11, %v2427_v62, %v576_v30  ;;  %vm649_vm14 = vcmp.eq.s32.totalorder %v2223_v41, %v2505_v44  ;;  %v668_v32 = vsel %vm648_vm5, %v2430_v34, %v621_v46  ;;  %vm694_vm7 = vcmp.eq.s32.totalorder %v2220_v40, %v2519_v13 }
  0x88   : > { %v669_v7 = vsel %vm649_vm14, %v2430_v34, %v622_v31  ;;  %vm695_vm15 = vcmp.eq.s32.totalorder %v2223_v41, %v2519_v13  ;;  %v714_v11 = vsel %vm694_vm7, %v2456_v53, %v668_v32  ;;  %v870_v15 = vand.u32 4294901760, %v2770_v55 }
  0x89   : > { %v715_v24 = vsel %vm695_vm15, %v2456_v53, %v669_v7  ;;  %v757_v0 = vand.u32 4294901760, %v714_v11  ;;  %v877_v10 = vand.u32 4294901760, %v2780_v20  ;;  %vm330_vm9 = vcmp.eq.s32.totalorder %v2226_v47, %v2348_v37 }
  0x8a   : > { %v760_v38 = vand.u32 4294901760, %v715_v24  ;;  %v871_v40 = vsub.f32 %v2770_v55, %v870_v15  ;;  %vm331_vm2 = vcmp.eq.s32.totalorder %v2229_v48, %v2348_v37  ;;  %v350_v41 = vsel %vm330_vm9, %v2300_v52, 0.0 }
  0x8b   : > { %v2900_v39 = vsub.f32 %v714_v11, %v757_v0  ;;  %v878_v30 = vsub.f32 %v2780_v20, %v877_v10  ;;  %v351_v46 = vsel %vm331_vm2, %v2300_v52, 0.0  ;;  %vm384_vm10 = vcmp.eq.s32.totalorder %v2226_v47, %v2367_v51 }
  0x8c   : > { %v2908_v31 = vpack.c.bf16 %v760_v38, %v757_v0  ;;  %v2910_v32 = vsub.f32 %v715_v24, %v760_v38  ;;  %v872_v7 = vand.u32 4294901760, %v871_v40  ;;  %vm385_vm12 = vcmp.eq.s32.totalorder %v2229_v48, %v2367_v51 }
  0x8d   : > { %v879_v37 = vand.u32 4294901760, %v878_v30  ;;  %v404_v11 = vsel %vm384_vm10, %v2303_v54, %v350_v41  ;;  %v405_v33 = vsel %vm385_vm12, %v2303_v54, %v351_v46  ;;  %vm448_vm8 = vcmp.eq.s32.totalorder %v2226_v47, %v2416_v45 }
  0x8e   : > { %1816 = vmatpush3.bf16.msra.mxu0 %v2908_v31  ;;  %vm449_vm13 = vcmp.eq.s32.totalorder %v2229_v48, %v2416_v45  ;;  %v468_v52 = vsel %vm448_vm8, %v2316_v3, %v404_v11  ;;  %vm497_vm3 = vcmp.eq.s32.totalorder %v2226_v47, %v2446_v19  ;;  %vm498_vm4 = vcmp.eq.s32.totalorder %v2229_v48, %v2446_v19 }
  0x8f   : > { %v1833_v51 = vpack.c.bf16 %v879_v37, %v872_v7  ;;  %1817 = vmatprep.subr.bf16.mxu0 %v2085_v1  ;;  %v469_v54 = vsel %vm449_vm13, %v2316_v3, %v405_v33  ;;  %v517_v24 = vsel %vm497_vm3, %v2339_v28, %v468_v52  ;;  %vm557_vm6 = vcmp.eq.s32.totalorder %v2226_v47, %v2465_v4 }
  0x90   : > { %v518_v45 = vsel %vm498_vm4, %v2339_v28, %v469_v54  ;;  %vm558_vm1 = vcmp.eq.s32.totalorder %v2229_v48, %v2465_v4  ;;  %v577_v0 = vsel %vm557_vm6, %v2360_v63, %v517_v24  ;;  %vm603_vm11 = vcmp.eq.s32.totalorder %v2226_v47, %v2484_v8 }
  0x91   : > { %1834 = vmatpush3.bf16.msra.mxu1 %v1833_v51  ;;  %v578_v19 = vsel %vm558_vm1, %v2360_v63, %v518_v45  ;;  %vm604_vm5 = vcmp.eq.s32.totalorder %v2229_v48, %v2484_v8  ;;  %v623_v33 = vsel %vm603_vm11, %v2427_v62, %v577_v0  ;;  %vm650_vm14 = vcmp.eq.s32.totalorder %v2226_v47, %v2505_v44 }
  0x92   : > { %1835 = vmatprep.subr.bf16.mxu1 %v2085_v1  ;;  %v624_v3 = vsel %vm604_vm5, %v2427_v62, %v578_v19  ;;  %vm651_vm7 = vcmp.eq.s32.totalorder %v2229_v48, %v2505_v44  ;;  %v670_v28 = vsel %vm650_vm14, %v2430_v34, %v623_v33  ;;  %vm696_vm15 = vcmp.eq.s32.totalorder %v2226_v47, %v2519_v13 }
  0x93   : > { %v671_v63 = vsel %vm651_vm7, %v2430_v34, %v624_v3  ;;  %vm697_vm9 = vcmp.eq.s32.totalorder %v2229_v48, %v2519_v13  ;;  %v716_v4 = vsel %vm696_vm15, %v2456_v53, %v670_v28  ;;  %v884_v8 = vand.u32 4294901760, %v2835_v29 }
  0x94   : > { %v717_v38 = vsel %vm697_vm9, %v2456_v53, %v671_v63  ;;  %v763_v62 = vand.u32 4294901760, %v716_v4  ;;  %v891_v40 = vand.u32 4294901760, %v2845_v26  ;;  %v898_v44 = vand.u32 4294901760, %v2900_v39 }
  0x95   : > { %v766_v41 = vand.u32 4294901760, %v717_v38  ;;  %v885_v47 = vsub.f32 %v2835_v29, %v884_v8  ;;  %v905_v34 = vand.u32 4294901760, %v2910_v32  ;;  %v805_v52 = vand.u32 4294901760, %v2234_v49 }
  0x96   : > { %v2962_v30 = vsub.f32 %v716_v4, %v763_v62  ;;  %v892_v48 = vsub.f32 %v2845_v26, %v891_v40  ;;  %v899_v53 = vsub.f32 %v2900_v39, %v898_v44  ;;  %v1845_v45 = vpack.c.bf16 %v2554_v61, %v2552_v43 }
  0x97   : > { %v2970_v13 = vpack.c.bf16 %v766_v41, %v763_v62  ;;  %v2972_v46 = vsub.f32 %v717_v38, %v766_v41  ;;  %v886_v7 = vand.u32 4294901760, %v885_v47  ;;  %v906_v37 = vsub.f32 %v2910_v32, %v905_v34 }
  0x98   : > { %v893_v11 = vand.u32 4294901760, %v892_v48  ;;  %v900_v51 = vand.u32 4294901760, %v899_v53  ;;  %v912_v54 = vand.u32 4294901760, %v2962_v30  ;;  %v1893_v28 = vpack.c.bf16 %v821_v58, %v814_v50 }
  0x99   : > { %1819 = vmatpush3.bf16.msra.mxu0 %v2970_v13  ;;  %v907_v24 = vand.u32 4294901760, %v906_v37  ;;  %v919_v0 = vand.u32 4294901760, %v2972_v46  ;;  %v1896_v4 = vpack.c.bf16 %v835_v59, %v828_v25  ;;  %v1899_v38 = vpack.c.bf16 %v849_v60, %v842_v14 }
  0x9a   : > { %v1836_v19 = vpack.c.bf16 %v893_v11, %v886_v7  ;;  %1844 = vmatprep.subr.bf16.mxu0 %v2085_v1  ;;  %v913_v33 = vsub.f32 %v2962_v30, %v912_v54  ;;  %v1902_v43 = vpack.c.bf16 %v863_v5, %v856_v27  ;;  %v1848_v50 = vpack.c.bf16 %v2594_v6, %v2586_v2 }
  0x9b   : > { %v1839_v3 = vpack.c.bf16 %v907_v24, %v900_v51  ;;  %v920_v49 = vsub.f32 %v2972_v46, %v919_v0  ;;  %v1905_v58 = vpack.c.bf16 %v877_v10, %v870_v15  ;;  %v1851_v59 = vpack.c.bf16 %v2652_v42, %v2650_v22  ;;  %v718_v15 = vld [vmem:[#allocation2] sm:$0xf] }
  0x9c   : > { %1837 = vmatpush3.bf16.msra.mxu1 %v1836_v19  ;;  %1619 = vmatmul.mubr.f32.vlgmr.msra.gmra.mrb[0].mxu0 %v805_v52  ;;  %v914_v63 = vand.u32 4294901760, %v913_v33  ;;  %v1854_v2 = vpack.c.bf16 %v2715_v57, %v2705_v23  ;;  %v1857_v6 = vpack.c.bf16 %v2780_v20, %v2770_v55  ;;  %v1860_v22 = vpack.c.bf16 %v2845_v26, %v2835_v29 }
  0x9d   : > { %1838 = vmatprep.subr.bf16.mxu1 %v2085_v1  ;;  %1846 = vmatpush3.bf16.msra.mxu0 %v1845_v45  ;;  %v921_v61 = vand.u32 4294901760, %v920_v49  ;;  %v1863_v42 = vpack.c.bf16 %v2910_v32, %v2900_v39  ;;  %v1866_v23 = vpack.c.bf16 %v2972_v46, %v2962_v30  ;;  %v3185_v57 = vand.u32 4294901760, %v2178_v17 }
  0x9e   : > { %1847 = vmatprep.subr.bf16.mxu0 %v2085_v1  ;;  %1688 = vmatprep.mubr.msk.f32.mxu0 %vm2086_vm0, %v2087_v16 }
  0x9f   : > { %v1842_v25 = vpack.c.bf16 %v921_v61, %v914_v63 }
  0xa0   : > { %1840 = vmatpush3.bf16.msra.mxu1 %v1839_v3 }
  0xa1   : > { %1841 = vmatprep.subr.bf16.mxu1 %v2085_v1  ;;  %1849 = vmatpush3.bf16.msra.mxu0 %v1848_v50 }
  0xa2   : > { %1850 = vmatprep.subr.bf16.mxu0 %v2085_v1 }
  0xa4   : > { %1843 = vmatpush3.bf16.msra.mxu1 %v1842_v25 }
  0xa5   : > { %1868 = vmatprep.subr.bf16.mxu1 %v2085_v1  ;;  %1852 = vmatpush3.bf16.msra.mxu0 %v1851_v59 }
  0xa6   : > { %1853 = vmatprep.subr.bf16.mxu0 %v2085_v1 }
  0xa7   : > { %1654 = vmatmul.mubr.f32.vlgmr.msra.gmra.mrb[0].mxu1 %v2170_v9 }
  0xa8   : > { %1870 = vmatpush3.bf16.msra.mxu1 %v2550_v35  ;;  %1723 = vmatprep.mubr.msk.f32.mxu1 %vm2086_vm0, %v2087_v16 }
  0xa9   : > { %1871 = vmatprep.subr.bf16.mxu1 %v2085_v1  ;;  %1855 = vmatpush3.bf16.msra.mxu0 %v1854_v2 }
  0xaa   : > { %1856 = vmatprep.subr.bf16.mxu0 %v2085_v1 }
  0xac   : > { %1873 = vmatpush3.bf16.msra.mxu1 %v2592_v56 }
  0xad   : > { %1874 = vmatprep.subr.bf16.mxu1 %v2085_v1  ;;  %1858 = vmatpush3.bf16.msra.mxu0 %v1857_v6 }
  0xae   : > { %1859 = vmatprep.subr.bf16.mxu0 %v2085_v1 }
  0xb0   : > { %1876 = vmatpush3.bf16.msra.mxu1 %v2648_v36 }
  0xb1   : > { %1877 = vmatprep.subr.bf16.mxu1 %v2085_v1  ;;  %1861 = vmatpush3.bf16.msra.mxu0 %v1860_v22 }
  0xb2   : > { %1862 = vmatprep.subr.bf16.mxu0 %v2085_v1 }
  0xb4   : > { %1879 = vmatpush3.bf16.msra.mxu1 %v2713_v18 }
  0xb5   : > { %1880 = vmatprep.subr.bf16.mxu1 %v2085_v1  ;;  %1864 = vmatpush3.bf16.msra.mxu0 %v1863_v42 }
  0xb6   : > { %1865 = vmatprep.subr.bf16.mxu0 %v2085_v1 }
  0xb8   : > { %1882 = vmatpush3.bf16.msra.mxu1 %v2778_v12 }
  0xb9   : > { %1883 = vmatprep.subr.bf16.mxu1 %v2085_v1  ;;  %1867 = vmatpush3.bf16.msra.mxu0 %v1866_v23 }
  0xba   : > { %1892 = vmatprep.subr.bf16.mxu0 %v2085_v1 }
  0xbc   : > { %1885 = vmatpush3.bf16.msra.mxu1 %v2843_v21  ;;  %1689 = vmatmul.mubr.f32.vlgmr.msra.gmra.mrb[2].mxu0 %v2178_v17  ;;  %v1908_v17 = vpack.c.bf16 %v891_v40, %v884_v8 }
  0xbd   : > { %1886 = vmatprep.subr.bf16.mxu1 %v2085_v1  ;;  %1894 = vmatpush3.bf16.msra.mxu0 %v1893_v28 }
  0xbe   : > { %1895 = vmatprep.subr.bf16.mxu0 %v2085_v1  ;;  %1758 = vmatprep.mubr.msk.f32.mxu0 %vm2086_vm0, %v2087_v16 }
  0xc0   : > { %1888 = vmatpush3.bf16.msra.mxu1 %v2908_v31 }
  0xc1   : > { %1889 = vmatprep.subr.bf16.mxu1 %v2085_v1  ;;  %1897 = vmatpush3.bf16.msra.mxu0 %v1896_v4 }
  0xc2   : > { %1898 = vmatprep.subr.bf16.mxu0 %v2085_v1 }
  0xc4   : > { %1891 = vmatpush3.bf16.msra.mxu1 %v2970_v13 }
  0xc5   : > { %1916 = vmatprep.subr.bf16.mxu1 %v2085_v1  ;;  %1900 = vmatpush3.bf16.msra.mxu0 %v1899_v38 }
  0xc6   : > { %1901 = vmatprep.subr.bf16.mxu0 %v2085_v1 }
  0xc7   : > { %1724 = vmatmul.mubr.f32.vlgmr.msra.gmra.mrb[2].mxu1 %v3185_v57 }
  0xc8   : > { %1918 = vmatpush3.bf16.msra.mxu1 %v2550_v35  ;;  %1793 = vmatprep.mubr.msk.f32.mxu1 %vm2086_vm0, %v2087_v16  ;;  %v1911_v16 = vpack.c.bf16 %v905_v34, %v898_v44  ;;  %v1914_v35 = vpack.c.bf16 %v919_v0, %v912_v54 }
  0xc9   : > { %1919 = vmatprep.subr.bf16.mxu1 %v2085_v1  ;;  %1903 = vmatpush3.bf16.msra.mxu0 %v1902_v43 }
  0xca   : > { %1904 = vmatprep.subr.bf16.mxu0 %v2085_v1 }
  0xcc   : > { %1921 = vmatpush3.bf16.msra.mxu1 %v2592_v56 }
  0xcd   : > { %1922 = vmatprep.subr.bf16.mxu1 %v2085_v1  ;;  %1906 = vmatpush3.bf16.msra.mxu0 %v1905_v58 }
  0xce   : > { %1907 = vmatprep.subr.bf16.mxu0 %v2085_v1 }
  0xd0   : > { %1924 = vmatpush3.bf16.msra.mxu1 %v2648_v36 }
  0xd1   : > { %1925 = vmatprep.subr.bf16.mxu1 %v2085_v1  ;;  %1909 = vmatpush3.bf16.msra.mxu0 %v1908_v17 }
  0xd2   : > { %1910 = vmatprep.subr.bf16.mxu0 %v2085_v1 }
  0xd4   : > { %1927 = vmatpush3.bf16.msra.mxu1 %v2713_v18 }
  0xd5   : > { %1928 = vmatprep.subr.bf16.mxu1 %v2085_v1  ;;  %1912 = vmatpush3.bf16.msra.mxu0 %v1911_v16 }
  0xd6   : > { %1913 = vmatprep.subr.bf16.mxu0 %v2085_v1 }
  0xd8   : > { %1930 = vmatpush3.bf16.msra.mxu1 %v2778_v12 }
  0xd9   : > { %1931 = vmatprep.subr.bf16.mxu1 %v2085_v1  ;;  %1915 = vmatpush3.bf16.msra.mxu0 %v1914_v35 }
  0xdc   : > { %1933 = vmatpush3.bf16.msra.mxu1 %v2843_v21  ;;  %1759 = vmatmul.mubr.f32.vlgmr.msra.gmra.mrb[4].mxu0 %v2170_v9 }
  0xdd   : > { %1934 = vmatprep.subr.bf16.mxu1 %v2085_v1 }
  0xe0   : > { %1936 = vmatpush3.bf16.msra.mxu1 %v2908_v31 }
  0xe1   : > { %1937 = vmatprep.subr.bf16.mxu1 %v2085_v1 }
  0xe4   : > { %1939 = vmatpush3.bf16.msra.mxu1 %v2970_v13 }
  0xe7   : > { %1794 = vmatmul.mubr.f32.vlgmr.msra.gmra.mrb[4].mxu1 %v2170_v9 }
 0x16f   : > { %v807_v56 = vpop.f32.mrb[0].mxu0 }
 0x170   : > { %v1620_v36 = vpop.f32.mrb[1].mxu0 }
 0x17a   : > { %v958_v18 = vpop.f32.mrb[0].mxu1 }
 0x17b   : > { %v959_v14 = vadd.f32 %v958_v18, %v807_v56  ;;  %v1655_v60 = vpop.f32.mrb[1].mxu1 }
 0x18f   : > { %v1062_v55 = vpop.f32.mrb[2].mxu0 }
 0x190   : > { %v1063_v12 = vadd.f32 %v1062_v55, %v959_v14  ;;  %v1690_v20 = vpop.f32.mrb[3].mxu0 }
 0x19a   : > { %v1151_v27 = vpop.f32.mrb[2].mxu1 }
 0x19b   : > { %v1152_v5 = vadd.f32 %v1151_v27, %v1063_v12  ;;  %v1725_v29 = vpop.f32.mrb[3].mxu1 }
 0x1af   : > { %v1270_v21 = vpop.f32.mrb[4].mxu0 }
 0x1b0   : > { %v1271_v26 = vadd.f32 %v1270_v21, %v1152_v5  ;;  %v1760_v1 = vpop.f32.mrb[5].mxu0 }
 0x1ba   : > { %v1357_v10 = vpop.f32.mrb[4].mxu1 }
 0x1bb   : > { %v1358_v9 = vadd.f32 %v1357_v10, %v1271_v26  ;;  %v1795_v39 = vpop.f32.mrb[5].mxu1 }
 0x1bd   : > { %v1361_v31 = vadd.f32 %v1358_v9, %v718_v15 }
 0x1bf   : > { %1362 = vst [vmem:[#allocation2] sm:$0xf] %v1361_v31 }
 0x1c6   : > { %v1366_v32 = vld [vmem:[#allocation2] sm:$0xf] }
 0x1c7   : > { %1367 = vst [vmem:[%s184_s6] sm:$0xf] %v1366_v32 }
 0x1c8   : > { %2018 = shalt.err (!%p2015_p5)
}
 0x1c9   : > { %s2019_s25 = scalar_lea.hbm %s3104_s16, 64  ;;  %s2023_s28 = scalar_lea.hbm %s3153_s2, 128 }
 0x1ca   : > { %p2020_p6 = scmp.ne.s32.totalorder %s3104_s16, %s2019_s25  ;;  %p2024_p10 = scmp.lt.u32.totalorder %s3104_s16, %s3153_s2 }
 0x1cb   : > { %p2025_p11 = scmp.lt.u32.totalorder %s2023_s28, %s2019_s25  ;;  %p2027_p13 = scmp.lt.u32.totalorder %s2019_s25, %s3104_s16 }
 0x1cc   : > { %p2021_p7 = pnand %p2020_p6, %p2145_p4 }
 0x1cd   : > { %p2026_p12 = por %p2025_p11, %p2024_p10 }
 0x1ce   : > { %p2022_p9 = pneg %p2021_p7 }
 0x1cf   : > { %p2028_p0 = por %p2027_p13, %p2026_p12 }
 0x1d1   : > { %p2029_p1 = pnand %p2028_p0, %p2022_p9 }
 0x1d3   : > { %2032 = shalt.err (!%p2029_p1)
}
 0x1d4   : > { %1946 = dma.vmem_to_hbm [thread:$0]  (%p2145_p4), %s3106_s7, 64, %s3104_s16, %s1369_s18  }
 0x1d5 PF: > { %p1952_p2 = scmp.ge.s32.totalorder %s2083_s14, 2  ;;  %s1395_s3 = sand.u32 1, %s2063_s9  }
 0x1d6   : > { %s1396_s4 = scalar_lea.sflag [#allocation4], %s1395_s3 }
 0x1d7   : > { %p1949_p3 = pnand %p1952_p2, %p2152_p8 }
 0x1d9   : > { %2058 = dma.done.wait (!%p1949_p3), %s1396_s4, 64  }
 0x1da   : > { %2060 = vsyncadd (!%p1949_p3), %s1396_s4, 4294967232  ;;  %s15_s14 = sadd.s32 1, %s2083_s14   ;;  %s3186_s9 = smov %s2067_s10 }
 0x1db   : > { %p12_p5 = scmp.ge.s32.totalorder %s15_s14, 4   ;;  %s3187_s10 = smov %s2071_s11 }
 0x1dc   : > { %s3188_s11 = smov %s2158_s22  ;;  %s3189_s12 = smov %s2079_s13 }
 0x1dd   : > { %s3190_s13 = smov %s3192_s17  ;;  %14 = sbr.rel (!%p12_p5) target bundleno = 4 (0x4), region = 74 }
 0x1e4   :  { %1401 = vsyncpa [#allocation4], 1 }
 0x1e5   :  { %1403 = vsyncpa [#allocation4 + $0x1], 1 }

</bundles_post_ra>
